<compile_context>
chip_gen: v7x
topology: tpu7x:2x2x1
jax: 0.10.0
libtpu: 0.0.40
codegen_flags: <defaults>
</compile_context>

<pallas_src>
import functools

import jax
import jax.numpy as jnp
from jax.experimental import pallas as pl
from jax.experimental.pallas import tpu as pltpu

LANE = 128
SLAB1 = 200   # conv1: 14*14 pooled positions, padded up to a multiple of 8
SLAB2 = 32    # conv2: 5*5 pooled positions, padded up to a multiple of 8
VMEM_LIMIT = 32 * 1024 * 1024


# ---------------------------------------------------------------------------
# Pallas kernels
# ---------------------------------------------------------------------------
def _conv_relu_pool_kernel(p_ref, w_ref, b_ref, o_ref, *, slab):
    """Fused im2col-GEMM + bias + ReLU + 2x2 max-pool for one image.

    p_ref : (1, 4*slab, K)  patch rows grouped by pool offset (dy,dx); within a
                            group, rows are ordered (pooled_row * Wp + pooled_col).
    w_ref : (K, 128)        weights, output channels zero-padded to 128 lanes.
    b_ref : (1, 128)        bias, zero-padded.
    o_ref : (1, slab, 128)  pooled activations (rows >= Hp*Wp are padding).
    """
    w = w_ref[...]
    b = b_ref[...]

    def slab_act(s):
        a = jnp.dot(p_ref[0, s * slab:(s + 1) * slab, :], w,
                    preferred_element_type=jnp.float32)
        return jnp.maximum(a + b, 0.0)

    m = slab_act(0)
    for s in range(1, 4):                       # max over the 4 pool offsets
        m = jnp.maximum(m, slab_act(s))
    o_ref[0] = m.astype(o_ref.dtype)


def _fc_fused_kernel(x_ref, w1_ref, b1_ref, w2_ref, b2_ref, w3_ref, b3_ref,
                     o_ref):
    """fc1+ReLU -> fc2+ReLU -> fc3, weights resident in VMEM, one launch."""
    h = jnp.dot(x_ref[...], w1_ref[...],
                preferred_element_type=jnp.float32) + b1_ref[...]
    h = jnp.maximum(h, 0.0)
    h = jnp.dot(h, w2_ref[...],
                preferred_element_type=jnp.float32) + b2_ref[...]
    h = jnp.maximum(h, 0.0)
    o = jnp.dot(h, w3_ref[...],
                preferred_element_type=jnp.float32) + b3_ref[...]
    o_ref[...] = o.astype(o_ref.dtype)


# ---------------------------------------------------------------------------
# Wrappers
# ---------------------------------------------------------------------------
def conv_relu_pool(patches, w, b, slab):
    """patches: (B, 4*slab, K), w: (K, 128), b: (1, 128) -> (B, slab, 128)."""
    B, R, K = patches.shape
    return pl.pallas_call(
        functools.partial(_conv_relu_pool_kernel, slab=slab),
        out_shape=jax.ShapeDtypeStruct((B, slab, LANE), jnp.float32),
        grid=(B,),
        in_specs=[
            pl.BlockSpec((1, R, K), lambda i: (i, 0, 0)),
            pl.BlockSpec((K, LANE), lambda i: (0, 0)),
            pl.BlockSpec((1, LANE), lambda i: (0, 0)),
        ],
        out_specs=pl.BlockSpec((1, slab, LANE), lambda i: (i, 0, 0)),
        compiler_params=pltpu.CompilerParams(
            dimension_semantics=("parallel",),
            vmem_limit_bytes=VMEM_LIMIT),
    )(patches, w, b)


def fc_fused(x, w1, b1, w2, b2, w3, b3):
    """x: (B, 400) -> logits padded to (B, 128); slice [:, :10] outside."""
    B = x.shape[0]
    vmem = pl.BlockSpec(memory_space=pltpu.MemorySpace.VMEM)
    return pl.pallas_call(
        _fc_fused_kernel,
        out_shape=jax.ShapeDtypeStruct((B, LANE), jnp.float32),
        in_specs=[vmem] * 7,
        out_specs=vmem,
        compiler_params=pltpu.CompilerParams(vmem_limit_bytes=VMEM_LIMIT),
    )(x, w1, b1, w2, b2, w3, b3)


def _im2col_pool_ordered(x_nhwc, kh, kw, slab):
    """x_nhwc: (B,H,W,C) -> (B, 4*slab, C*kh*kw).

    Patch rows are grouped by 2x2-pool offset s = dy*2+dx and ordered
    (pooled_row * Wp + pooled_col) within each group (zero-padded to `slab`
    rows).  Columns follow PyTorch weight order (c, i, j).
    """
    B, H, W, C = x_nhwc.shape
    Ho, Wo = H - kh + 1, W - kw + 1
    Hp, Wp = Ho // 2, Wo // 2
    K = C * kh * kw
    slices = [x_nhwc[:, i:i + Ho, j:j + Wo, :]
              for i in range(kh) for j in range(kw)]          # each (B,Ho,Wo,C)
    p = jnp.stack(slices, axis=-1)                            # (B,Ho,Wo,C,kh*kw)
    p = p.reshape(B, Ho, Wo, K)                               # col = c*kh*kw+i*kw+j
    p = p.reshape(B, Hp, 2, Wp, 2, K)                         # ho=2*pr+dy, wo=2*pc+dx
    p = p.transpose(0, 2, 4, 1, 3, 5)                         # (B,dy,dx,pr,pc,K)
    p = p.reshape(B, 4, Hp * Wp, K)
    p = jnp.pad(p, ((0, 0), (0, 0), (0, slab - Hp * Wp), (0, 0)))
    return p.reshape(B, 4 * slab, K)


# ---------------------------------------------------------------------------
# Parameters (deterministic, PyTorch-style uniform(-1/sqrt(fan_in), +))
# ---------------------------------------------------------------------------
def init_params(key):
    def uniform(k, shape, fan_in):
        bound = 1.0 / jnp.sqrt(jnp.float32(fan_in))
        return jax.random.uniform(k, shape, jnp.float32, -bound, bound)

    ks = jax.random.split(key, 10)
    return {
        "conv1_w": uniform(ks[0], (6, 3, 5, 5), 3 * 5 * 5),
        "conv1_b": uniform(ks[1], (6,), 3 * 5 * 5),
        "conv2_w": uniform(ks[2], (16, 6, 5, 5), 6 * 5 * 5),
        "conv2_b": uniform(ks[3], (16,), 6 * 5 * 5),
        "fc1_w": uniform(ks[4], (120, 400), 400),
        "fc1_b": uniform(ks[5], (120,), 400),
        "fc2_w": uniform(ks[6], (84, 120), 120),
        "fc2_b": uniform(ks[7], (84,), 120),
        "fc3_w": uniform(ks[8], (10, 84), 84),
        "fc3_b": uniform(ks[9], (10,), 84),
    }


def prepare_params(p):
    """One-time weight prep: transpose to (K, N), pad N to 128, permute fc1
    columns from PyTorch NCHW-flatten order to our NHWC-flatten order."""
    def pad_cols(a):
        return jnp.pad(a, ((0, 0), (0, LANE - a.shape[1])))

    def pad_bias(b):
        return jnp.pad(b, (0, LANE - b.shape[0])).reshape(1, LANE)

    conv1_w = pad_cols(p["conv1_w"].reshape(6, 75).T)               # (75, 128)
    conv2_w = pad_cols(p["conv2_w"].reshape(16, 150).T)             # (150, 128)
    # fc1: PyTorch flatten index is c*25+h*5+w; our flatten is (h*5+w)*16+c.
    fc1 = p["fc1_w"].reshape(120, 16, 5, 5).transpose(2, 3, 1, 0).reshape(400, 120)
    fc1_w = pad_cols(fc1)                                           # (400, 128)
    fc2_w = jnp.pad(p["fc2_w"].T, ((0, LANE - 120), (0, LANE - 84)))  # (128,128)
    fc3_w = jnp.pad(p["fc3_w"].T, ((0, LANE - 84), (0, LANE - 10)))   # (128,128)
    return {
        "conv1_w": conv1_w, "conv1_b": pad_bias(p["conv1_b"]),
        "conv2_w": conv2_w, "conv2_b": pad_bias(p["conv2_b"]),
        "fc1_w": fc1_w, "fc1_b": pad_bias(p["fc1_b"]),
        "fc2_w": fc2_w, "fc2_b": pad_bias(p["fc2_b"]),
        "fc3_w": fc3_w, "fc3_b": pad_bias(p["fc3_b"]),
    }


# ---------------------------------------------------------------------------
# Forward pass (matches Net.forward exactly; input is NCHW like PyTorch)
# ---------------------------------------------------------------------------
@jax.jit
def net_forward(x, pp):
    B = x.shape[0]
    x = jnp.transpose(x, (0, 2, 3, 1))                      # single NCHW->NHWC
    p1 = _im2col_pool_ordered(x, 5, 5, SLAB1)               # (B, 800, 75)
    a1 = conv_relu_pool(p1, pp["conv1_w"], pp["conv1_b"], SLAB1)   # (B, 200, 128)
    a1 = a1[:, :14 * 14, :6].reshape(B, 14, 14, 6)          # NHWC
    p2 = _im2col_pool_ordered(a1, 5, 5, SLAB2)              # (B, 128, 150)
    a2 = conv_relu_pool(p2, pp["conv2_w"], pp["conv2_b"], SLAB2)   # (B, 32, 128)
    a2 = a2[:, :25, :16].reshape(B, 400)                    # NHWC flatten
    out = fc_fused(a2, pp["fc1_w"], pp["fc1_b"],
                   pp["fc2_w"], pp["fc2_b"],
                   pp["fc3_w"], pp["fc3_b"])                # (B, 128)
    return out[:, :10]


if __name__ == "__main__":
    key = jax.random.PRNGKey(0)
    k_params, k_x = jax.random.split(key)
    params = prepare_params(init_params(k_params))
    # Input must be 32x32 for the 16*5*5 flatten to line up (CIFAR-style).
    x = jax.random.normal(k_x, (2, 3, 32, 32), jnp.float32)
    out = net_forward(x, params)
    out = jax.block_until_ready(out)
    assert out.shape == (2, 10), out.shape
    print("KERNEL_OK")
</pallas_src>

<mosaic_0001>
module attributes {stable_mosaic.version = 11 : i64} {
  func.func @_conv_relu_pool_kernel(%arg0: i32, %arg1: memref<1x800x75xf32, #tpu.memory_space<vmem>>, %arg2: memref<75x128xf32, #tpu.memory_space<vmem>>, %arg3: memref<1x128xf32, #tpu.memory_space<vmem>>, %arg4: memref<1x200x128xf32, #tpu.memory_space<vmem>>) attributes {dimension_semantics = [#tpu.dimension_semantics<parallel>], iteration_bounds = array<i64: 2>, scalar_prefetch = 0 : i64, scratch_operands = 0 : i64, tpu.core_type = #tpu.core_type<tc>, window_params = [{transform_indices = @transform_0, window_bounds = array<i64: 1, 800, 75>}, {pipeline_mode = #tpu.pipeline_mode<synchronous>, transform_indices = @transform_1, window_bounds = array<i64: 75, 128>}, {pipeline_mode = #tpu.pipeline_mode<synchronous>, transform_indices = @transform_2, window_bounds = array<i64: 1, 128>}, {transform_indices = @transform_3, window_bounds = array<i64: 1, 200, 128>}]} {
    %c0 = arith.constant 0 : index
    %c0_0 = arith.constant 0 : index
    %0 = vector.load %arg2[%c0, %c0_0] : memref<75x128xf32, #tpu.memory_space<vmem>>, vector<75x128xf32>
    %c0_1 = arith.constant 0 : index
    %c0_2 = arith.constant 0 : index
    %1 = vector.load %arg3[%c0_1, %c0_2] : memref<1x128xf32, #tpu.memory_space<vmem>>, vector<1x128xf32>
    %c0_3 = arith.constant 0 : index
    %c0_4 = arith.constant 0 : index
    %c0_5 = arith.constant 0 : index
    %2 = vector.load %arg1[%c0_3, %c0_4, %c0_5] : memref<1x800x75xf32, #tpu.memory_space<vmem>>, vector<1x200x75xf32>
    %3 = vector.shape_cast %2 : vector<1x200x75xf32> to vector<200x75xf32>
    %cst = arith.constant dense<0.000000e+00> : vector<200x128xf32>
    %4 = tpu.matmul %3, %0, %cst {dimension_numbers = #tpu.dot_dimension_numbers<[1], [0], [0], [1], [0, 0, 1, 1], [], []>} : vector<200x75xf32>, vector<75x128xf32>, vector<200x128xf32> -> vector<200x128xf32>
    %5 = vector.broadcast %1 : vector<1x128xf32> to vector<200x128xf32>
    %6 = arith.addf %4, %5 : vector<200x128xf32>
    %cst_6 = arith.constant 0.000000e+00 : f32
    %7 = vector.broadcast %cst_6 : f32 to vector<200x128xf32>
    %8 = arith.maximumf %6, %7 : vector<200x128xf32>
    %c0_7 = arith.constant 0 : index
    %c200 = arith.constant 200 : index
    %c0_8 = arith.constant 0 : index
    %9 = vector.load %arg1[%c0_7, %c200, %c0_8] : memref<1x800x75xf32, #tpu.memory_space<vmem>>, vector<1x200x75xf32>
    %10 = vector.shape_cast %9 : vector<1x200x75xf32> to vector<200x75xf32>
    %cst_9 = arith.constant dense<0.000000e+00> : vector<200x128xf32>
    %11 = tpu.matmul %10, %0, %cst_9 {dimension_numbers = #tpu.dot_dimension_numbers<[1], [0], [0], [1], [0, 0, 1, 1], [], []>} : vector<200x75xf32>, vector<75x128xf32>, vector<200x128xf32> -> vector<200x128xf32>
    %12 = vector.broadcast %1 : vector<1x128xf32> to vector<200x128xf32>
    %13 = arith.addf %11, %12 : vector<200x128xf32>
    %cst_10 = arith.constant 0.000000e+00 : f32
    %14 = vector.broadcast %cst_10 : f32 to vector<200x128xf32>
    %15 = arith.maximumf %13, %14 : vector<200x128xf32>
    %16 = arith.maximumf %8, %15 : vector<200x128xf32>
    %c0_11 = arith.constant 0 : index
    %c400 = arith.constant 400 : index
    %c0_12 = arith.constant 0 : index
    %17 = vector.load %arg1[%c0_11, %c400, %c0_12] : memref<1x800x75xf32, #tpu.memory_space<vmem>>, vector<1x200x75xf32>
    %18 = vector.shape_cast %17 : vector<1x200x75xf32> to vector<200x75xf32>
    %cst_13 = arith.constant dense<0.000000e+00> : vector<200x128xf32>
    %19 = tpu.matmul %18, %0, %cst_13 {dimension_numbers = #tpu.dot_dimension_numbers<[1], [0], [0], [1], [0, 0, 1, 1], [], []>} : vector<200x75xf32>, vector<75x128xf32>, vector<200x128xf32> -> vector<200x128xf32>
    %20 = vector.broadcast %1 : vector<1x128xf32> to vector<200x128xf32>
    %21 = arith.addf %19, %20 : vector<200x128xf32>
    %cst_14 = arith.constant 0.000000e+00 : f32
    %22 = vector.broadcast %cst_14 : f32 to vector<200x128xf32>
    %23 = arith.maximumf %21, %22 : vector<200x128xf32>
    %24 = arith.maximumf %16, %23 : vector<200x128xf32>
    %c0_15 = arith.constant 0 : index
    %c600 = arith.constant 600 : index
    %c0_16 = arith.constant 0 : index
    %25 = vector.load %arg1[%c0_15, %c600, %c0_16] : memref<1x800x75xf32, #tpu.memory_space<vmem>>, vector<1x200x75xf32>
    %26 = vector.shape_cast %25 : vector<1x200x75xf32> to vector<200x75xf32>
    %cst_17 = arith.constant dense<0.000000e+00> : vector<200x128xf32>
    %27 = tpu.matmul %26, %0, %cst_17 {dimension_numbers = #tpu.dot_dimension_numbers<[1], [0], [0], [1], [0, 0, 1, 1], [], []>} : vector<200x75xf32>, vector<75x128xf32>, vector<200x128xf32> -> vector<200x128xf32>
    %28 = vector.broadcast %1 : vector<1x128xf32> to vector<200x128xf32>
    %29 = arith.addf %27, %28 : vector<200x128xf32>
    %cst_18 = arith.constant 0.000000e+00 : f32
    %30 = vector.broadcast %cst_18 : f32 to vector<200x128xf32>
    %31 = arith.maximumf %29, %30 : vector<200x128xf32>
    %32 = arith.maximumf %24, %31 : vector<200x128xf32>
    %c0_19 = arith.constant 0 : index
    %c0_20 = arith.constant 0 : index
    %c0_21 = arith.constant 0 : index
    %33 = vector.load %arg4[%c0_19, %c0_20, %c0_21] : memref<1x200x128xf32, #tpu.memory_space<vmem>>, vector<1x200x128xf32>
    %34 = vector.shape_cast %33 : vector<1x200x128xf32> to vector<200x128xf32>
    %35 = vector.shape_cast %32 : vector<200x128xf32> to vector<1x200x128xf32>
    tpu.vector_store %arg4[%c0_19, %c0_20, %c0_21], %35 {strides = array<i32>} : memref<1x200x128xf32, #tpu.memory_space<vmem>>, vector<1x200x128xf32>,
    return
  }
  func.func @transform_0(%arg0: i32) -> (i32, i32, i32) {
    %c0_i32 = arith.constant 0 : i32
    %c0_i32_0 = arith.constant 0 : i32
    %c0_i32_1 = arith.constant 0 : i32
    return %arg0, %c0_i32, %c0_i32_0 : i32, i32, i32
  }
  func.func @transform_1(%arg0: i32) -> (i32, i32) {
    %c0_i32 = arith.constant 0 : i32
    %c0_i32_0 = arith.constant 0 : i32
    %c0_i32_1 = arith.constant 0 : i32
    return %c0_i32, %c0_i32_0 : i32, i32
  }
  func.func @transform_2(%arg0: i32) -> (i32, i32) {
    %c0_i32 = arith.constant 0 : i32
    %c0_i32_0 = arith.constant 0 : i32
    %c0_i32_1 = arith.constant 0 : i32
    return %c0_i32, %c0_i32_0 : i32, i32
  }
  func.func @transform_3(%arg0: i32) -> (i32, i32, i32) {
    %c0_i32 = arith.constant 0 : i32
    %c0_i32_0 = arith.constant 0 : i32
    %c0_i32_1 = arith.constant 0 : i32
    return %arg0, %c0_i32, %c0_i32_0 : i32, i32, i32
  }
}

module attributes {stable_mosaic.version = 11 : i64} {
  func.func @_conv_relu_pool_kernel(%arg0: i32, %arg1: memref<1x128x150xf32, #tpu.memory_space<vmem>>, %arg2: memref<150x128xf32, #tpu.memory_space<vmem>>, %arg3: memref<1x128xf32, #tpu.memory_space<vmem>>, %arg4: memref<1x32x128xf32, #tpu.memory_space<vmem>>) attributes {dimension_semantics = [#tpu.dimension_semantics<parallel>], iteration_bounds = array<i64: 2>, scalar_prefetch = 0 : i64, scratch_operands = 0 : i64, tpu.core_type = #tpu.core_type<tc>, window_params = [{transform_indices = @transform_0, window_bounds = array<i64: 1, 128, 150>}, {pipeline_mode = #tpu.pipeline_mode<synchronous>, transform_indices = @transform_1, window_bounds = array<i64: 150, 128>}, {pipeline_mode = #tpu.pipeline_mode<synchronous>, transform_indices = @transform_2, window_bounds = array<i64: 1, 128>}, {transform_indices = @transform_3, window_bounds = array<i64: 1, 32, 128>}]} {
    %c0 = arith.constant 0 : index
    %c0_0 = arith.constant 0 : index
    %0 = vector.load %arg2[%c0, %c0_0] : memref<150x128xf32, #tpu.memory_space<vmem>>, vector<150x128xf32>
    %c0_1 = arith.constant 0 : index
    %c0_2 = arith.constant 0 : index
    %1 = vector.load %arg3[%c0_1, %c0_2] : memref<1x128xf32, #tpu.memory_space<vmem>>, vector<1x128xf32>
    %c0_3 = arith.constant 0 : index
    %c0_4 = arith.constant 0 : index
    %c0_5 = arith.constant 0 : index
    %2 = vector.load %arg1[%c0_3, %c0_4, %c0_5] : memref<1x128x150xf32, #tpu.memory_space<vmem>>, vector<1x32x150xf32>
    %3 = vector.shape_cast %2 : vector<1x32x150xf32> to vector<32x150xf32>
    %cst = arith.constant dense<0.000000e+00> : vector<32x128xf32>
    %4 = tpu.matmul %3, %0, %cst {dimension_numbers = #tpu.dot_dimension_numbers<[1], [0], [0], [1], [0, 0, 1, 1], [], []>} : vector<32x150xf32>, vector<150x128xf32>, vector<32x128xf32> -> vector<32x128xf32>
    %5 = vector.broadcast %1 : vector<1x128xf32> to vector<32x128xf32>
    %6 = arith.addf %4, %5 : vector<32x128xf32>
    %cst_6 = arith.constant 0.000000e+00 : f32
    %7 = vector.broadcast %cst_6 : f32 to vector<32x128xf32>
    %8 = arith.maximumf %6, %7 : vector<32x128xf32>
    %c0_7 = arith.constant 0 : index
    %c32 = arith.constant 32 : index
    %c0_8 = arith.constant 0 : index
    %9 = vector.load %arg1[%c0_7, %c32, %c0_8] : memref<1x128x150xf32, #tpu.memory_space<vmem>>, vector<1x32x150xf32>
    %10 = vector.shape_cast %9 : vector<1x32x150xf32> to vector<32x150xf32>
    %cst_9 = arith.constant dense<0.000000e+00> : vector<32x128xf32>
    %11 = tpu.matmul %10, %0, %cst_9 {dimension_numbers = #tpu.dot_dimension_numbers<[1], [0], [0], [1], [0, 0, 1, 1], [], []>} : vector<32x150xf32>, vector<150x128xf32>, vector<32x128xf32> -> vector<32x128xf32>
    %12 = vector.broadcast %1 : vector<1x128xf32> to vector<32x128xf32>
    %13 = arith.addf %11, %12 : vector<32x128xf32>
    %cst_10 = arith.constant 0.000000e+00 : f32
    %14 = vector.broadcast %cst_10 : f32 to vector<32x128xf32>
    %15 = arith.maximumf %13, %14 : vector<32x128xf32>
    %16 = arith.maximumf %8, %15 : vector<32x128xf32>
    %c0_11 = arith.constant 0 : index
    %c64 = arith.constant 64 : index
    %c0_12 = arith.constant 0 : index
    %17 = vector.load %arg1[%c0_11, %c64, %c0_12] : memref<1x128x150xf32, #tpu.memory_space<vmem>>, vector<1x32x150xf32>
    %18 = vector.shape_cast %17 : vector<1x32x150xf32> to vector<32x150xf32>
    %cst_13 = arith.constant dense<0.000000e+00> : vector<32x128xf32>
    %19 = tpu.matmul %18, %0, %cst_13 {dimension_numbers = #tpu.dot_dimension_numbers<[1], [0], [0], [1], [0, 0, 1, 1], [], []>} : vector<32x150xf32>, vector<150x128xf32>, vector<32x128xf32> -> vector<32x128xf32>
    %20 = vector.broadcast %1 : vector<1x128xf32> to vector<32x128xf32>
    %21 = arith.addf %19, %20 : vector<32x128xf32>
    %cst_14 = arith.constant 0.000000e+00 : f32
    %22 = vector.broadcast %cst_14 : f32 to vector<32x128xf32>
    %23 = arith.maximumf %21, %22 : vector<32x128xf32>
    %24 = arith.maximumf %16, %23 : vector<32x128xf32>
    %c0_15 = arith.constant 0 : index
    %c96 = arith.constant 96 : index
    %c0_16 = arith.constant 0 : index
    %25 = vector.load %arg1[%c0_15, %c96, %c0_16] : memref<1x128x150xf32, #tpu.memory_space<vmem>>, vector<1x32x150xf32>
    %26 = vector.shape_cast %25 : vector<1x32x150xf32> to vector<32x150xf32>
    %cst_17 = arith.constant dense<0.000000e+00> : vector<32x128xf32>
    %27 = tpu.matmul %26, %0, %cst_17 {dimension_numbers = #tpu.dot_dimension_numbers<[1], [0], [0], [1], [0, 0, 1, 1], [], []>} : vector<32x150xf32>, vector<150x128xf32>, vector<32x128xf32> -> vector<32x128xf32>
    %28 = vector.broadcast %1 : vector<1x128xf32> to vector<32x128xf32>
    %29 = arith.addf %27, %28 : vector<32x128xf32>
    %cst_18 = arith.constant 0.000000e+00 : f32
    %30 = vector.broadcast %cst_18 : f32 to vector<32x128xf32>
    %31 = arith.maximumf %29, %30 : vector<32x128xf32>
    %32 = arith.maximumf %24, %31 : vector<32x128xf32>
    %c0_19 = arith.constant 0 : index
    %c0_20 = arith.constant 0 : index
    %c0_21 = arith.constant 0 : index
    %33 = vector.load %arg4[%c0_19, %c0_20, %c0_21] : memref<1x32x128xf32, #tpu.memory_space<vmem>>, vector<1x32x128xf32>
    %34 = vector.shape_cast %33 : vector<1x32x128xf32> to vector<32x128xf32>
    %35 = vector.shape_cast %32 : vector<32x128xf32> to vector<1x32x128xf32>
    tpu.vector_store %arg4[%c0_19, %c0_20, %c0_21], %35 {strides = array<i32>} : memref<1x32x128xf32, #tpu.memory_space<vmem>>, vector<1x32x128xf32>,
    return
  }
  func.func @transform_0(%arg0: i32) -> (i32, i32, i32) {
    %c0_i32 = arith.constant 0 : i32
    %c0_i32_0 = arith.constant 0 : i32
    %c0_i32_1 = arith.constant 0 : i32
    return %arg0, %c0_i32, %c0_i32_0 : i32, i32, i32
  }
  func.func @transform_1(%arg0: i32) -> (i32, i32) {
    %c0_i32 = arith.constant 0 : i32
    %c0_i32_0 = arith.constant 0 : i32
    %c0_i32_1 = arith.constant 0 : i32
    return %c0_i32, %c0_i32_0 : i32, i32
  }
  func.func @transform_2(%arg0: i32) -> (i32, i32) {
    %c0_i32 = arith.constant 0 : i32
    %c0_i32_0 = arith.constant 0 : i32
    %c0_i32_1 = arith.constant 0 : i32
    return %c0_i32, %c0_i32_0 : i32, i32
  }
  func.func @transform_3(%arg0: i32) -> (i32, i32, i32) {
    %c0_i32 = arith.constant 0 : i32
    %c0_i32_0 = arith.constant 0 : i32
    %c0_i32_1 = arith.constant 0 : i32
    return %arg0, %c0_i32, %c0_i32_0 : i32, i32, i32
  }
}

module attributes {stable_mosaic.version = 11 : i64} {
  func.func @_fc_fused_kernel(%arg0: memref<2x400xf32, #tpu.memory_space<vmem>>, %arg1: memref<400x128xf32, #tpu.memory_space<vmem>>, %arg2: memref<1x128xf32, #tpu.memory_space<vmem>>, %arg3: memref<128x128xf32, #tpu.memory_space<vmem>>, %arg4: memref<1x128xf32, #tpu.memory_space<vmem>>, %arg5: memref<128x128xf32, #tpu.memory_space<vmem>>, %arg6: memref<1x128xf32, #tpu.memory_space<vmem>>, %arg7: memref<2x128xf32, #tpu.memory_space<vmem>>) attributes {dimension_semantics = [], scalar_prefetch = 0 : i64, scratch_operands = 0 : i64, tpu.core_type = #tpu.core_type<tc>} {
    %c0 = arith.constant 0 : index
    %c0_0 = arith.constant 0 : index
    %0 = vector.load %arg0[%c0, %c0_0] : memref<2x400xf32, #tpu.memory_space<vmem>>, vector<2x400xf32>
    %c0_1 = arith.constant 0 : index
    %c0_2 = arith.constant 0 : index
    %1 = vector.load %arg1[%c0_1, %c0_2] : memref<400x128xf32, #tpu.memory_space<vmem>>, vector<400x128xf32>
    %cst = arith.constant dense<0.000000e+00> : vector<2x128xf32>
    %2 = tpu.matmul %0, %1, %cst {dimension_numbers = #tpu.dot_dimension_numbers<[1], [0], [0], [1], [0, 0, 1, 1], [], []>} : vector<2x400xf32>, vector<400x128xf32>, vector<2x128xf32> -> vector<2x128xf32>
    %c0_3 = arith.constant 0 : index
    %c0_4 = arith.constant 0 : index
    %3 = vector.load %arg2[%c0_3, %c0_4] : memref<1x128xf32, #tpu.memory_space<vmem>>, vector<1x128xf32>
    %4 = vector.broadcast %3 : vector<1x128xf32> to vector<2x128xf32>
    %5 = arith.addf %2, %4 : vector<2x128xf32>
    %cst_5 = arith.constant 0.000000e+00 : f32
    %6 = vector.broadcast %cst_5 : f32 to vector<2x128xf32>
    %7 = arith.maximumf %5, %6 : vector<2x128xf32>
    %c0_6 = arith.constant 0 : index
    %c0_7 = arith.constant 0 : index
    %8 = vector.load %arg3[%c0_6, %c0_7] : memref<128x128xf32, #tpu.memory_space<vmem>>, vector<128x128xf32>
    %cst_8 = arith.constant dense<0.000000e+00> : vector<2x128xf32>
    %9 = tpu.matmul %7, %8, %cst_8 {dimension_numbers = #tpu.dot_dimension_numbers<[1], [0], [0], [1], [0, 0, 1, 1], [], []>} : vector<2x128xf32>, vector<128x128xf32>, vector<2x128xf32> -> vector<2x128xf32>
    %c0_9 = arith.constant 0 : index
    %c0_10 = arith.constant 0 : index
    %10 = vector.load %arg4[%c0_9, %c0_10] : memref<1x128xf32, #tpu.memory_space<vmem>>, vector<1x128xf32>
    %11 = vector.broadcast %10 : vector<1x128xf32> to vector<2x128xf32>
    %12 = arith.addf %9, %11 : vector<2x128xf32>
    %cst_11 = arith.constant 0.000000e+00 : f32
    %13 = vector.broadcast %cst_11 : f32 to vector<2x128xf32>
    %14 = arith.maximumf %12, %13 : vector<2x128xf32>
    %c0_12 = arith.constant 0 : index
    %c0_13 = arith.constant 0 : index
    %15 = vector.load %arg5[%c0_12, %c0_13] : memref<128x128xf32, #tpu.memory_space<vmem>>, vector<128x128xf32>
    %cst_14 = arith.constant dense<0.000000e+00> : vector<2x128xf32>
    %16 = tpu.matmul %14, %15, %cst_14 {dimension_numbers = #tpu.dot_dimension_numbers<[1], [0], [0], [1], [0, 0, 1, 1], [], []>} : vector<2x128xf32>, vector<128x128xf32>, vector<2x128xf32> -> vector<2x128xf32>
    %c0_15 = arith.constant 0 : index
    %c0_16 = arith.constant 0 : index
    %17 = vector.load %arg6[%c0_15, %c0_16] : memref<1x128xf32, #tpu.memory_space<vmem>>, vector<1x128xf32>
    %18 = vector.broadcast %17 : vector<1x128xf32> to vector<2x128xf32>
    %19 = arith.addf %16, %18 : vector<2x128xf32>
    %c0_17 = arith.constant 0 : index
    %c0_18 = arith.constant 0 : index
    %20 = vector.load %arg7[%c0_17, %c0_18] : memref<2x128xf32, #tpu.memory_space<vmem>>, vector<2x128xf32>
    tpu.vector_store %arg7[%c0_17, %c0_18], %19 {strides = array<i32>} : memref<2x128xf32, #tpu.memory_space<vmem>>, vector<2x128xf32>,
    return
  }
}

</mosaic_0001>

<bundles_post_ra>
// kernel: net_forward.3
= control target key start
LH: loop header
LB: loop body
LE: loop exit
PB: predicated region body
PF: predicated region fallthrough
CT: control target
= control target key end

     0   :  { %s2352_s12 = smov 0   ;;  %s3048_s0 = inlined_call_operand.vmem [shape: f32[2,800,75], index: 0, kind: input, shape index: {}]   ;;  %s3049_s1 = inlined_call_operand.vmem [shape: f32[75,128], index: 1, kind: input, shape index: {}]   ;;  %s3050_s2 = inlined_call_operand.vmem [shape: f32[1,128], index: 2, kind: input, shape index: {}]   ;;  %s3051_s3 = inlined_call_operand.vmem [shape: f32[2,200,128], index: 3, kind: output, shape index: {}]  }
   0x1 LB: > { %s1608_s13 = sadd.s32 4294967295, %s2326_s12   ;;  %p1612_p0 = scmp.ge.s32.totalorder %s2326_s12, 1  ;;  %s2326_s12 = sphi %s2352_s12, %s13_s12  }
   0x2   : > { %p137_p1 = scmp.lt.s32.totalorder %s2326_s12, 3 }
   0x4   : > { %p138_p2 = pnand %p1612_p0, %p137_p1 }
   0x5   : > { %v171_v0 = vld [vmem:[%s3049_s1] sm:$0xff] (!%p138_p2)  ;;  %v172_v1 = vld [vmem:[%s3049_s1 + $0x8] sm:$0xff] (!%p138_p2)  ;;  %v173_v2 = vld [vmem:[%s3049_s1 + $0x10] sm:$0xff] (!%p138_p2)  ;;  %v2328_v3 = vmov (!%p138_p2), 0.0|0.0   ;;  %vm2329_vm0 = vmmov (!%p138_p2), 0   ;;  %v2330_v6 = vmov (!%p138_p2), 0.0  }
   0x6   : > { %141 = sbr.rel (%p138_p2) target bundleno = 444 (0x1bc), region = 32  ;;  %2242 = vmatprep.subr.bf16.mxu0 (!%p138_p2), %v2328_v3  ;;  %v2243_v4 = vpack.c.bf16 (!%p138_p2), %v172_v1, %v171_v0  ;;  %2258 = vmatprep.subr.bf16.mxu1 (!%p138_p2), %v2328_v3  ;;  %v174_v5 = vld [vmem:[%s3049_s1 + $0x18] sm:$0xff] (!%p138_p2)  ;;  %v175_v8 = vld [vmem:[%s3049_s1 + $0x20] sm:$0xff] (!%p138_p2)  ;;  %v176_v9 = vld [vmem:[%s3049_s1 + $0x28] sm:$0xff] (!%p138_p2)  ;;  %p161_p3 = scmp.lt.s32.totalorder (!%p138_p2), %s1608_s13, 1  ;;  %vm289_vm1 = vcmask (!%p138_p2), 1042432  }
   0x7   : > { %1882 = vmatprep.mubr.msk.f32.mxu0 (!%p138_p2), %vm2329_vm0, %v2330_v6  ;;  %1977 = vmatprep.mubr.msk.f32.mxu1 (!%p138_p2), %vm2329_vm0, %v2330_v6  ;;  %v2246_v7 = vpack.c.bf16 (!%p138_p2), %v174_v5, %v173_v2  ;;  %v2249_v10 = vpack.c.bf16 (!%p138_p2), %v176_v9, %v175_v8  ;;  %v177_v11 = vld [vmem:[%s3049_s1 + $0x30] sm:$0xff] (!%p138_p2)  ;;  %v178_v12 = vld [vmem:[%s3049_s1 + $0x38] sm:$0xff] (!%p138_p2)  ;;  %v179_v14 = vld [vmem:[%s3049_s1 + $0x40] sm:$0xff] (!%p138_p2)  ;;  %vm2331_vm2 = vmmov (!%p138_p2), 1   ;;  %vm213_vm4 = vcmask (!%p138_p2), 613376  }
   0x8   : > { %2244 = vmatpush3.bf16.msra.mxu0 (!%p138_p2), %v2243_v4  ;;  %2260 = vmatpush3.bf16.msra.mxu1 (!%p138_p2), %v2243_v4  ;;  %v2252_v13 = vpack.c.bf16 (!%p138_p2), %v178_v12, %v177_v11  ;;  %v180_v15 = vld [vmem:[%s3049_s1 + $0x48] sm:$0x7] (!%p138_p2)  ;;  %vm2410_vm3 = vmpackc.low (!%p138_p2), %vm289_vm1, %vm2331_vm2 }
   0x9   : > { %2245 = vmatprep.subr.bf16.mxu0 (!%p138_p2), %v2328_v3  ;;  %2261 = vmatprep.subr.bf16.mxu1 (!%p138_p2), %v2328_v3  ;;  %v2255_v16 = vpack.c.bf16 (!%p138_p2), %v180_v15, %v179_v14 }
   0xc   : > { %2247 = vmatpush3.bf16.msra.mxu0 (!%p138_p2), %v2246_v7  ;;  %2263 = vmatpush3.bf16.msra.mxu1 (!%p138_p2), %v2246_v7 }
   0xd   : > { %2248 = vmatprep.subr.bf16.mxu0 %v2328_v3  ;;  %2264 = vmatprep.subr.bf16.mxu1 %v2328_v3  ;;  %s3055_s13 = smov (!%p161_p3, %s1608_s13), 1 }
   0xe   : > { %s2306_s7 = smul.u32 800, %s3055_s13 }
   0xf   : > { %s2307_s15 = smul.u32 200, %s3055_s13 }
  0x10   : > { %2250 = vmatpush3.bf16.msra.mxu0 %v2249_v10  ;;  %2266 = vmatpush3.bf16.msra.mxu1 %v2249_v10  ;;  %s2418_s10 = scalar_lea.vmem %s3048_s0, %s2306_s7 }
  0x11   : > { %2251 = vmatprep.subr.bf16.mxu0 %v2328_v3  ;;  %2267 = vmatprep.subr.bf16.mxu1 %v2328_v3  ;;  %v182_v18 = vld [vmem:[%s2418_s10] sm:$0xff]  ;;  %v508_v19 = vld [vmem:[%s2418_s10 + $0xc8] sm:$0xff]  ;;  %v509_v21 = vld [vmem:[%s2418_s10 + $0xd0] sm:$0xff]  ;;  %s2948_s18 = scalar_lea.vmem %s3051_s3, %s2307_s15 }
  0x12   : > { %v183_v20 = vld [vmem:[%s2418_s10 + $0x8] sm:$0xff]  ;;  %v184_v22 = vld [vmem:[%s2418_s10 + $0x10] sm:$0xff]  ;;  %v510_v23 = vld [vmem:[%s2418_s10 + $0xd8] sm:$0xff] }
  0x13   : > { %v185_v24 = vld [vmem:[%s2418_s10 + $0x18] sm:$0xff]  ;;  %v511_v25 = vld [vmem:[%s2418_s10 + $0xe0] sm:$0xff]  ;;  %v512_v27 = vld [vmem:[%s2418_s10 + $0xe8] sm:$0xff] }
  0x14   : > { %2253 = vmatpush3.bf16.msra.mxu0 %v2252_v13  ;;  %2269 = vmatpush3.bf16.msra.mxu1 %v2252_v13  ;;  %v186_v26 = vld [vmem:[%s2418_s10 + $0x20] sm:$0xff]  ;;  %v187_v28 = vld [vmem:[%s2418_s10 + $0x28] sm:$0xff]  ;;  %v513_v29 = vld [vmem:[%s2418_s10 + $0xf0] sm:$0xff] }
  0x15   : > { %2254 = vmatprep.subr.bf16.mxu0 %v2328_v3  ;;  %2270 = vmatprep.subr.bf16.mxu1 %v2328_v3  ;;  %v188_v30 = vld [vmem:[%s2418_s10 + $0x30] sm:$0xff]  ;;  %v514_v31 = vld [vmem:[%s2418_s10 + $0xf8] sm:$0xff]  ;;  %v515_v33 = vld [vmem:[%s2418_s10 + $0x100] sm:$0xff] }
  0x16   : > { %v189_v32 = vld [vmem:[%s2418_s10 + $0x38] sm:$0xff]  ;;  %v190_v34 = vld [vmem:[%s2418_s10 + $0x40] sm:$0xff]  ;;  %v516_v35 = vld [vmem:[%s2418_s10 + $0x108] sm:$0xff] }
  0x17   : > { %v191_v36 = vld [vmem:[%s2418_s10 + $0x48] sm:$0xff]  ;;  %v517_v37 = vld [vmem:[%s2418_s10 + $0x110] sm:$0xff]  ;;  %v518_v39 = vld [vmem:[%s2418_s10 + $0x118] sm:$0xff] }
  0x18   : > { %2257 = vmatpush3.bf16.msk.msra.mxu0 %vm2410_vm3, %v2255_v16  ;;  %2273 = vmatpush3.bf16.msk.msra.mxu1 %vm2410_vm3, %v2255_v16  ;;  %v192_v38 = vld [vmem:[%s2418_s10 + $0x50] sm:$0xff]  ;;  %v193_v40 = vld [vmem:[%s2418_s10 + $0x58] sm:$0xff]  ;;  %v519_v41 = vld [vmem:[%s2418_s10 + $0x120] sm:$0xff] }
  0x19   : > { %2274 = vmatprep.subr.bf16.mxu0 %v2328_v3  ;;  %2290 = vmatprep.subr.bf16.mxu1 %v2328_v3  ;;  %v194_v42 = vld [vmem:[%s2418_s10 + $0x60] sm:$0xff]  ;;  %v520_v43 = vld [vmem:[%s2418_s10 + $0x128] sm:$0xff]  ;;  %v521_v45 = vld [vmem:[%s2418_s10 + $0x130] sm:$0xff] }
  0x1a   : > { %v195_v44 = vld [vmem:[%s2418_s10 + $0x68] sm:$0xff]  ;;  %v196_v46 = vld [vmem:[%s2418_s10 + $0x70] sm:$0xff]  ;;  %v522_v47 = vld [vmem:[%s2418_s10 + $0x138] sm:$0xff] }
  0x1b   : > { %1883 = vmatmul.mubr.msk.f32.vlgmr.msra.gmra.mrb[0].mxu0 %vm213_vm4, %v182_v18  ;;  %1978 = vmatmul.mubr.msk.f32.vlgmr.msra.gmra.mrb[0].mxu1 %vm213_vm4, %v508_v19  ;;  %v197_v48 = vld [vmem:[%s2418_s10 + $0x78] sm:$0xff]  ;;  %v523_v49 = vld [vmem:[%s2418_s10 + $0x140] sm:$0xff]  ;;  %v524_v51 = vld [vmem:[%s2418_s10 + $0x148] sm:$0xff] }
  0x1c   : > { %2276 = vmatpush3.bf16.msra.mxu0 %v2243_v4  ;;  %1885 = vmatprep.mubr.msk.f32.mxu0 %vm2329_vm0, %v2330_v6  ;;  %v198_v50 = vld [vmem:[%s2418_s10 + $0x80] sm:$0xff]  ;;  %v199_v52 = vld [vmem:[%s2418_s10 + $0x88] sm:$0xff]  ;;  %v525_v53 = vld [vmem:[%s2418_s10 + $0x150] sm:$0xff] }
  0x1d   : > { %2292 = vmatpush3.bf16.msra.mxu1 %v2243_v4  ;;  %1980 = vmatprep.mubr.msk.f32.mxu1 %vm2329_vm0, %v2330_v6  ;;  %v200_v54 = vld [vmem:[%s2418_s10 + $0x90] sm:$0xff]  ;;  %v526_v55 = vld [vmem:[%s2418_s10 + $0x158] sm:$0xff]  ;;  %v527_v57 = vld [vmem:[%s2418_s10 + $0x160] sm:$0xff] }
  0x1e   : > { %2277 = vmatprep.subr.bf16.mxu0 %v2328_v3  ;;  %2293 = vmatprep.subr.bf16.mxu1 %v2328_v3  ;;  %v201_v56 = vld [vmem:[%s2418_s10 + $0x98] sm:$0xff]  ;;  %v202_v58 = vld [vmem:[%s2418_s10 + $0xa0] sm:$0xff]  ;;  %v528_v59 = vld [vmem:[%s2418_s10 + $0x168] sm:$0xff] }
  0x1f   : > { %1886 = vmatmul.mubr.msk.f32.gmra.mrb[2].mxu0 %vm213_vm4, %v183_v20  ;;  %1981 = vmatmul.mubr.msk.f32.gmra.mrb[2].mxu1 %vm213_vm4, %v509_v21  ;;  %v203_v60 = vld [vmem:[%s2418_s10 + $0xa8] sm:$0xff]  ;;  %v529_v61 = vld [vmem:[%s2418_s10 + $0x170] sm:$0xff]  ;;  %v530_v63 = vld [vmem:[%s2418_s10 + $0x178] sm:$0xff] }
  0x20   : > { %1888 = vmatprep.mubr.msk.f32.mxu0 %vm2329_vm0, %v2330_v6  ;;  %1983 = vmatprep.mubr.msk.f32.mxu1 %vm2329_vm0, %v2330_v6  ;;  %v204_v62 = vld [vmem:[%s2418_s10 + $0xb0] sm:$0xff]  ;;  %v205_v0 = vld [vmem:[%s2418_s10 + $0xb8] sm:$0xff]  ;;  %v531_v1 = vld [vmem:[%s2418_s10 + $0x180] sm:$0xff] }
  0x21   : > { %2279 = vmatpush3.bf16.msra.mxu0 %v2246_v7  ;;  %2295 = vmatpush3.bf16.msra.mxu1 %v2246_v7  ;;  %v206_v2 = vld [vmem:[%s2418_s10 + $0xc0] sm:$0xff]  ;;  %v848_v4 = vld [vmem:[%s2418_s10 + $0x190] sm:$0xff]  ;;  %v1188_v5 = vld [vmem:[%s2418_s10 + $0x258] sm:$0xff] }
  0x22   : > { %2280 = vmatprep.subr.bf16.mxu0 %v2328_v3  ;;  %2296 = vmatprep.subr.bf16.mxu1 %v2328_v3  ;;  %v849_v7 = vld [vmem:[%s2418_s10 + $0x198] sm:$0xff]  ;;  %v1189_v8 = vld [vmem:[%s2418_s10 + $0x260] sm:$0xff]  ;;  %v851_v11 = vld [vmem:[%s2418_s10 + $0x1a8] sm:$0xff] }
  0x23   : > { %1889 = vmatmul.mubr.msk.f32.gmra.mrb[4].mxu0 %vm213_vm4, %v184_v22  ;;  %1984 = vmatmul.mubr.msk.f32.gmra.mrb[4].mxu1 %vm213_vm4, %v510_v23  ;;  %v850_v9 = vld [vmem:[%s2418_s10 + $0x1a0] sm:$0xff]  ;;  %v1191_v12 = vld [vmem:[%s2418_s10 + $0x270] sm:$0xff]  ;;  %v1192_v14 = vld [vmem:[%s2418_s10 + $0x278] sm:$0xff] }
  0x24   : > { %1891 = vmatprep.mubr.msk.f32.mxu0 %vm2329_vm0, %v2330_v6  ;;  %1986 = vmatprep.mubr.msk.f32.mxu1 %vm2329_vm0, %v2330_v6  ;;  %v853_v15 = vld [vmem:[%s2418_s10 + $0x1b8] sm:$0xff]  ;;  %v854_v17 = vld [vmem:[%s2418_s10 + $0x1c0] sm:$0xff]  ;;  %v1194_v18 = vld [vmem:[%s2418_s10 + $0x288] sm:$0xff] }
  0x25   : > { %2282 = vmatpush3.bf16.msra.mxu0 %v2249_v10  ;;  %2298 = vmatpush3.bf16.msra.mxu1 %v2249_v10  ;;  %v1190_v10 = vld [vmem:[%s2418_s10 + $0x268] sm:$0xff]  ;;  %v1195_v20 = vld [vmem:[%s2418_s10 + $0x290] sm:$0xff]  ;;  %v1196_v22 = vld [vmem:[%s2418_s10 + $0x298] sm:$0xff] }
  0x26   : > { %2283 = vmatprep.subr.bf16.mxu0 %v2328_v3  ;;  %2299 = vmatprep.subr.bf16.mxu1 %v2328_v3  ;;  %v855_v19 = vld [vmem:[%s2418_s10 + $0x1c8] sm:$0xff]  ;;  %v856_v21 = vld [vmem:[%s2418_s10 + $0x1d0] sm:$0xff]  ;;  %v857_v23 = vld [vmem:[%s2418_s10 + $0x1d8] sm:$0xff] }
  0x27   : > { %1892 = vmatmul.mubr.msk.f32.gmra.mrb[6].mxu0 %vm213_vm4, %v185_v24  ;;  %1987 = vmatmul.mubr.msk.f32.gmra.mrb[6].mxu1 %vm213_vm4, %v511_v25  ;;  %v1197_v24 = vld [vmem:[%s2418_s10 + $0x2a0] sm:$0xff] }
  0x28   : > { %1894 = vmatprep.mubr.msk.f32.mxu0 %vm2329_vm0, %v2330_v6  ;;  %1989 = vmatprep.mubr.msk.f32.mxu1 %vm2329_vm0, %v2330_v6  ;;  %v858_v25 = vld [vmem:[%s2418_s10 + $0x1e0] sm:$0xff] }
  0x29   : > { %2285 = vmatpush3.bf16.msra.mxu0 %v2252_v13  ;;  %2301 = vmatpush3.bf16.msra.mxu1 %v2252_v13  ;;  %v852_v13 = vld [vmem:[%s2418_s10 + $0x1b0] sm:$0xff] }
  0x2a   : > { %2286 = vmatprep.subr.bf16.mxu0 %v2328_v3  ;;  %2302 = vmatprep.subr.bf16.mxu1 %v2328_v3  ;;  %v532_v3 = vld [vmem:[%s2418_s10 + $0x188] sm:$0xff] }
  0x2b   : > { %1895 = vmatmul.mubr.msk.f32.gmra.mrb[8].mxu0 %vm213_vm4, %v186_v26  ;;  %1990 = vmatmul.mubr.msk.f32.gmra.mrb[8].mxu1 %vm213_vm4, %v512_v27  ;;  %v1198_v26 = vld [vmem:[%s2418_s10 + $0x2a8] sm:$0xff] }
  0x2c   : > { %1897 = vmatprep.mubr.msk.f32.mxu0 %vm2329_vm0, %v2330_v6  ;;  %1992 = vmatprep.mubr.msk.f32.mxu1 %vm2329_vm0, %v2330_v6  ;;  %v859_v27 = vld [vmem:[%s2418_s10 + $0x1e8] sm:$0xff] }
  0x2d   : > { %2289 = vmatpush3.bf16.msk.msra.mxu0 %vm2410_vm3, %v2255_v16  ;;  %2305 = vmatpush3.bf16.msk.msra.mxu1 %vm2410_vm3, %v2255_v16  ;;  %v1193_v16 = vld [vmem:[%s2418_s10 + $0x280] sm:$0xff] }
  0x2f   : > { %1898 = vmatmul.mubr.msk.f32.gmra.mrb[10].mxu0 %vm213_vm4, %v187_v28  ;;  %1993 = vmatmul.mubr.msk.f32.gmra.mrb[10].mxu1 %vm213_vm4, %v513_v29  ;;  %v1199_v28 = vld [vmem:[%s2418_s10 + $0x2b0] sm:$0xff] }
  0x30   : > { %1900 = vmatprep.mubr.msk.f32.mxu0 %vm2329_vm0, %v2330_v6  ;;  %1995 = vmatprep.mubr.msk.f32.mxu1 %vm2329_vm0, %v2330_v6  ;;  %v860_v29 = vld [vmem:[%s2418_s10 + $0x1f0] sm:$0xff] }
  0x33   : > { %1901 = vmatmul.mubr.msk.f32.gmra.mrb[12].mxu0 %vm213_vm4, %v188_v30  ;;  %1996 = vmatmul.mubr.msk.f32.gmra.mrb[12].mxu1 %vm213_vm4, %v514_v31  ;;  %v1200_v30 = vld [vmem:[%s2418_s10 + $0x2b8] sm:$0xff] }
  0x34   : > { %1903 = vmatprep.mubr.msk.f32.mxu0 %vm2329_vm0, %v2330_v6  ;;  %1998 = vmatprep.mubr.msk.f32.mxu1 %vm2329_vm0, %v2330_v6  ;;  %v861_v31 = vld [vmem:[%s2418_s10 + $0x1f8] sm:$0xff] }
  0x37   : > { %1904 = vmatmul.mubr.msk.f32.gmra.mrb[14].mxu0 %vm213_vm4, %v189_v32  ;;  %1999 = vmatmul.mubr.msk.f32.gmra.mrb[14].mxu1 %vm213_vm4, %v515_v33  ;;  %v1201_v32 = vld [vmem:[%s2418_s10 + $0x2c0] sm:$0xff] }
  0x38   : > { %1906 = vmatprep.mubr.msk.f32.mxu0 %vm2329_vm0, %v2330_v6  ;;  %2001 = vmatprep.mubr.msk.f32.mxu1 %vm2329_vm0, %v2330_v6  ;;  %v862_v33 = vld [vmem:[%s2418_s10 + $0x200] sm:$0xff] }
  0x3b   : > { %1907 = vmatmul.mubr.msk.f32.gmra.mrb[16].mxu0 %vm213_vm4, %v190_v34  ;;  %2002 = vmatmul.mubr.msk.f32.gmra.mrb[16].mxu1 %vm213_vm4, %v516_v35  ;;  %v1202_v34 = vld [vmem:[%s2418_s10 + $0x2c8] sm:$0xff] }
  0x3c   : > { %1909 = vmatprep.mubr.msk.f32.mxu0 %vm2329_vm0, %v2330_v6  ;;  %2004 = vmatprep.mubr.msk.f32.mxu1 %vm2329_vm0, %v2330_v6  ;;  %v863_v35 = vld [vmem:[%s2418_s10 + $0x208] sm:$0xff] }
  0x3f   : > { %1910 = vmatmul.mubr.msk.f32.gmra.mrb[18].mxu0 %vm213_vm4, %v191_v36  ;;  %2005 = vmatmul.mubr.msk.f32.gmra.mrb[18].mxu1 %vm213_vm4, %v517_v37  ;;  %v1203_v36 = vld [vmem:[%s2418_s10 + $0x2d0] sm:$0xff] }
  0x40   : > { %1912 = vmatprep.mubr.msk.f32.mxu0 %vm2329_vm0, %v2330_v6  ;;  %2007 = vmatprep.mubr.msk.f32.mxu1 %vm2329_vm0, %v2330_v6  ;;  %v864_v37 = vld [vmem:[%s2418_s10 + $0x210] sm:$0xff] }
  0x43   : > { %1913 = vmatmul.mubr.msk.f32.gmra.mrb[20].mxu0 %vm213_vm4, %v192_v38  ;;  %2008 = vmatmul.mubr.msk.f32.gmra.mrb[20].mxu1 %vm213_vm4, %v518_v39  ;;  %v1204_v38 = vld [vmem:[%s2418_s10 + $0x2d8] sm:$0xff] }
  0x44   : > { %1915 = vmatprep.mubr.msk.f32.mxu0 %vm2329_vm0, %v2330_v6  ;;  %2010 = vmatprep.mubr.msk.f32.mxu1 %vm2329_vm0, %v2330_v6  ;;  %v865_v39 = vld [vmem:[%s2418_s10 + $0x218] sm:$0xff] }
  0x47   : > { %1916 = vmatmul.mubr.msk.f32.gmra.mrb[22].mxu0 %vm213_vm4, %v193_v40  ;;  %2011 = vmatmul.mubr.msk.f32.gmra.mrb[22].mxu1 %vm213_vm4, %v519_v41  ;;  %v1205_v40 = vld [vmem:[%s2418_s10 + $0x2e0] sm:$0xff] }
  0x48   : > { %1918 = vmatprep.mubr.msk.f32.mxu0 %vm2329_vm0, %v2330_v6  ;;  %2013 = vmatprep.mubr.msk.f32.mxu1 %vm2329_vm0, %v2330_v6  ;;  %v866_v41 = vld [vmem:[%s2418_s10 + $0x220] sm:$0xff] }
  0x4b   : > { %1919 = vmatmul.mubr.msk.f32.gmra.mrb[24].mxu0 %vm213_vm4, %v194_v42  ;;  %2014 = vmatmul.mubr.msk.f32.gmra.mrb[24].mxu1 %vm213_vm4, %v520_v43  ;;  %v1206_v42 = vld [vmem:[%s2418_s10 + $0x2e8] sm:$0xff] }
  0x4c   : > { %1921 = vmatprep.mubr.msk.f32.mxu0 %vm2329_vm0, %v2330_v6  ;;  %2016 = vmatprep.mubr.msk.f32.mxu1 %vm2329_vm0, %v2330_v6  ;;  %v867_v43 = vld [vmem:[%s2418_s10 + $0x228] sm:$0xff] }
  0x4f   : > { %1922 = vmatmul.mubr.msk.f32.gmra.mrb[26].mxu0 %vm213_vm4, %v195_v44  ;;  %2017 = vmatmul.mubr.msk.f32.gmra.mrb[26].mxu1 %vm213_vm4, %v521_v45  ;;  %v1207_v44 = vld [vmem:[%s2418_s10 + $0x2f0] sm:$0xff] }
  0x50   : > { %1924 = vmatprep.mubr.msk.f32.mxu0 %vm2329_vm0, %v2330_v6  ;;  %2019 = vmatprep.mubr.msk.f32.mxu1 %vm2329_vm0, %v2330_v6  ;;  %v868_v45 = vld [vmem:[%s2418_s10 + $0x230] sm:$0xff] }
  0x53   : > { %1925 = vmatmul.mubr.msk.f32.gmra.mrb[28].mxu0 %vm213_vm4, %v196_v46  ;;  %2020 = vmatmul.mubr.msk.f32.gmra.mrb[28].mxu1 %vm213_vm4, %v522_v47  ;;  %v1208_v46 = vld [vmem:[%s2418_s10 + $0x2f8] sm:$0xff] }
  0x54   : > { %1927 = vmatprep.mubr.msk.f32.mxu0 %vm2329_vm0, %v2330_v6  ;;  %2022 = vmatprep.mubr.msk.f32.mxu1 %vm2329_vm0, %v2330_v6  ;;  %v869_v47 = vld [vmem:[%s2418_s10 + $0x238] sm:$0xff] }
  0x57   : > { %1928 = vmatmul.mubr.msk.f32.gmra.mrb[30].mxu0 %vm213_vm4, %v197_v48  ;;  %2023 = vmatmul.mubr.msk.f32.gmra.mrb[30].mxu1 %vm213_vm4, %v523_v49  ;;  %v1209_v48 = vld [vmem:[%s2418_s10 + $0x300] sm:$0xff] }
  0x58   : > { %1930 = vmatprep.mubr.msk.f32.mxu0 %vm2329_vm0, %v2330_v6  ;;  %2025 = vmatprep.mubr.msk.f32.mxu1 %vm2329_vm0, %v2330_v6  ;;  %v870_v49 = vld [vmem:[%s2418_s10 + $0x240] sm:$0xff] }
  0x5b   : > { %1931 = vmatmul.mubr.msk.f32.gmra.mrb[32].mxu0 %vm213_vm4, %v198_v50  ;;  %2026 = vmatmul.mubr.msk.f32.gmra.mrb[32].mxu1 %vm213_vm4, %v524_v51  ;;  %v1210_v50 = vld [vmem:[%s2418_s10 + $0x308] sm:$0xff] }
  0x5c   : > { %1933 = vmatprep.mubr.msk.f32.mxu0 %vm2329_vm0, %v2330_v6  ;;  %2028 = vmatprep.mubr.msk.f32.mxu1 %vm2329_vm0, %v2330_v6  ;;  %v871_v51 = vld [vmem:[%s2418_s10 + $0x248] sm:$0xff] }
  0x5f   : > { %1934 = vmatmul.mubr.msk.f32.gmra.mrb[34].mxu0 %vm213_vm4, %v199_v52  ;;  %2029 = vmatmul.mubr.msk.f32.gmra.mrb[34].mxu1 %vm213_vm4, %v525_v53  ;;  %v1211_v52 = vld [vmem:[%s2418_s10 + $0x310] sm:$0xff] }
  0x60   : > { %1936 = vmatprep.mubr.msk.f32.mxu0 %vm2329_vm0, %v2330_v6  ;;  %2031 = vmatprep.mubr.msk.f32.mxu1 %vm2329_vm0, %v2330_v6  ;;  %v872_v53 = vld [vmem:[%s2418_s10 + $0x250] sm:$0xff] }
  0x63   : > { %1937 = vmatmul.mubr.msk.f32.gmra.mrb[36].mxu0 %vm213_vm4, %v200_v54  ;;  %2032 = vmatmul.mubr.msk.f32.gmra.mrb[36].mxu1 %vm213_vm4, %v526_v55  ;;  %v1212_v54 = vld [vmem:[%s2418_s10 + $0x318] sm:$0xff]  ;;  %v2837_v55 = vld [vmem:[%s3050_s2] ss:$0 sm:$0xff] }
  0x64   : > { %1939 = vmatprep.mubr.msk.f32.mxu0 %vm2329_vm0, %v2330_v6  ;;  %2034 = vmatprep.mubr.msk.f32.mxu1 %vm2329_vm0, %v2330_v6 }
  0x67   : > { %1940 = vmatmul.mubr.msk.f32.gmra.mrb[38].mxu0 %vm213_vm4, %v201_v56  ;;  %2035 = vmatmul.mubr.msk.f32.gmra.mrb[38].mxu1 %vm213_vm4, %v527_v57 }
  0x68   : > { %1942 = vmatprep.mubr.msk.f32.mxu0 %vm2329_vm0, %v2330_v6  ;;  %2037 = vmatprep.mubr.msk.f32.mxu1 %vm2329_vm0, %v2330_v6 }
  0x6b   : > { %1943 = vmatmul.mubr.msk.f32.gmra.mrb[40].mxu0 %vm213_vm4, %v202_v58  ;;  %2038 = vmatmul.mubr.msk.f32.gmra.mrb[40].mxu1 %vm213_vm4, %v528_v59 }
  0x6c   : > { %1945 = vmatprep.mubr.msk.f32.mxu0 %vm2329_vm0, %v2330_v6  ;;  %2040 = vmatprep.mubr.msk.f32.mxu1 %vm2329_vm0, %v2330_v6 }
  0x6f   : > { %1946 = vmatmul.mubr.msk.f32.gmra.mrb[42].mxu0 %vm213_vm4, %v203_v60  ;;  %2041 = vmatmul.mubr.msk.f32.gmra.mrb[42].mxu1 %vm213_vm4, %v529_v61 }
  0x70   : > { %1948 = vmatprep.mubr.msk.f32.mxu0 %vm2329_vm0, %v2330_v6  ;;  %2043 = vmatprep.mubr.msk.f32.mxu1 %vm2329_vm0, %v2330_v6 }
  0x73   : > { %1949 = vmatmul.mubr.msk.f32.gmra.mrb[44].mxu0 %vm213_vm4, %v204_v62  ;;  %2044 = vmatmul.mubr.msk.f32.gmra.mrb[44].mxu1 %vm213_vm4, %v530_v63 }
  0x74   : > { %1951 = vmatprep.mubr.msk.f32.mxu0 %vm2329_vm0, %v2330_v6  ;;  %2046 = vmatprep.mubr.msk.f32.mxu1 %vm2329_vm0, %v2330_v6 }
  0x77   : > { %1952 = vmatmul.mubr.msk.f32.gmra.mrb[46].mxu0 %vm213_vm4, %v205_v0  ;;  %2047 = vmatmul.mubr.msk.f32.gmra.mrb[46].mxu1 %vm213_vm4, %v531_v1 }
  0x78   : > { %1954 = vmatprep.mubr.msk.f32.mxu0 %vm2329_vm0, %v2330_v6  ;;  %2049 = vmatprep.mubr.msk.f32.mxu1 %vm2329_vm0, %v2330_v6 }
  0x7b   : > { %1955 = vmatmul.mubr.msk.f32.gmra.mrb[48].mxu0 %vm213_vm4, %v206_v2  ;;  %2050 = vmatmul.mubr.msk.f32.gmra.mrb[48].mxu1 %vm213_vm4, %v532_v3 }
  0x7c   : > { %2072 = vmatprep.mubr.msk.f32.mxu0 %vm2329_vm0, %v2330_v6  ;;  %2167 = vmatprep.mubr.msk.f32.mxu1 %vm2329_vm0, %v2330_v6 }
  0x7f   : > { %2073 = vmatmul.mubr.msk.f32.vlgmr.msra.gmra.mrb[50].mxu0 %vm213_vm4, %v848_v4  ;;  %2168 = vmatmul.mubr.msk.f32.vlgmr.msra.gmra.mrb[50].mxu1 %vm213_vm4, %v1188_v5 }
  0x80   : > { %2075 = vmatprep.mubr.msk.f32.mxu0 %vm2329_vm0, %v2330_v6  ;;  %2170 = vmatprep.mubr.msk.f32.mxu1 %vm2329_vm0, %v2330_v6 }
  0x83   : > { %2076 = vmatmul.mubr.msk.f32.gmra.mrb[52].mxu0 %vm213_vm4, %v849_v7  ;;  %2171 = vmatmul.mubr.msk.f32.gmra.mrb[52].mxu1 %vm213_vm4, %v1189_v8 }
  0x84   : > { %2078 = vmatprep.mubr.msk.f32.mxu0 %vm2329_vm0, %v2330_v6  ;;  %2173 = vmatprep.mubr.msk.f32.mxu1 %vm2329_vm0, %v2330_v6 }
  0x87   : > { %2079 = vmatmul.mubr.msk.f32.gmra.mrb[54].mxu0 %vm213_vm4, %v850_v9  ;;  %2174 = vmatmul.mubr.msk.f32.gmra.mrb[54].mxu1 %vm213_vm4, %v1190_v10 }
  0x88   : > { %2081 = vmatprep.mubr.msk.f32.mxu0 %vm2329_vm0, %v2330_v6  ;;  %2176 = vmatprep.mubr.msk.f32.mxu1 %vm2329_vm0, %v2330_v6 }
  0x8b   : > { %2082 = vmatmul.mubr.msk.f32.gmra.mrb[56].mxu0 %vm213_vm4, %v851_v11  ;;  %2177 = vmatmul.mubr.msk.f32.gmra.mrb[56].mxu1 %vm213_vm4, %v1191_v12 }
  0x8c   : > { %2084 = vmatprep.mubr.msk.f32.mxu0 %vm2329_vm0, %v2330_v6  ;;  %2179 = vmatprep.mubr.msk.f32.mxu1 %vm2329_vm0, %v2330_v6 }
  0x8f   : > { %2085 = vmatmul.mubr.msk.f32.gmra.mrb[58].mxu0 %vm213_vm4, %v852_v13  ;;  %2180 = vmatmul.mubr.msk.f32.gmra.mrb[58].mxu1 %vm213_vm4, %v1192_v14 }
  0x90   : > { %2087 = vmatprep.mubr.msk.f32.mxu0 %vm2329_vm0, %v2330_v6  ;;  %2182 = vmatprep.mubr.msk.f32.mxu1 %vm2329_vm0, %v2330_v6 }
  0x93   : > { %2088 = vmatmul.mubr.msk.f32.gmra.mrb[60].mxu0 %vm213_vm4, %v853_v15  ;;  %2183 = vmatmul.mubr.msk.f32.gmra.mrb[60].mxu1 %vm213_vm4, %v1193_v16 }
  0x94   : > { %2090 = vmatprep.mubr.msk.f32.mxu0 %vm2329_vm0, %v2330_v6  ;;  %2185 = vmatprep.mubr.msk.f32.mxu1 %vm2329_vm0, %v2330_v6 }
  0x97   : > { %2091 = vmatmul.mubr.msk.f32.gmra.mrb[62].mxu0 %vm213_vm4, %v854_v17  ;;  %2186 = vmatmul.mubr.msk.f32.gmra.mrb[62].mxu1 %vm213_vm4, %v1194_v18 }
  0x98   : > { %2093 = vmatprep.mubr.msk.f32.mxu0 %vm2329_vm0, %v2330_v6  ;;  %2188 = vmatprep.mubr.msk.f32.mxu1 %vm2329_vm0, %v2330_v6 }
  0x9b   : > { %2094 = vmatmul.mubr.msk.f32.gmra.mrb[64].mxu0 %vm213_vm4, %v855_v19  ;;  %2189 = vmatmul.mubr.msk.f32.gmra.mrb[64].mxu1 %vm213_vm4, %v1195_v20 }
  0x9c   : > { %2096 = vmatprep.mubr.msk.f32.mxu0 %vm2329_vm0, %v2330_v6  ;;  %2191 = vmatprep.mubr.msk.f32.mxu1 %vm2329_vm0, %v2330_v6 }
  0x9f   : > { %2097 = vmatmul.mubr.msk.f32.gmra.mrb[66].mxu0 %vm213_vm4, %v856_v21  ;;  %2192 = vmatmul.mubr.msk.f32.gmra.mrb[66].mxu1 %vm213_vm4, %v1196_v22 }
  0xa0   : > { %2099 = vmatprep.mubr.msk.f32.mxu0 %vm2329_vm0, %v2330_v6  ;;  %2194 = vmatprep.mubr.msk.f32.mxu1 %vm2329_vm0, %v2330_v6 }
  0xa3   : > { %2100 = vmatmul.mubr.msk.f32.gmra.mrb[68].mxu0 %vm213_vm4, %v857_v23  ;;  %2195 = vmatmul.mubr.msk.f32.gmra.mrb[68].mxu1 %vm213_vm4, %v1197_v24 }
  0xa4   : > { %2102 = vmatprep.mubr.msk.f32.mxu0 %vm2329_vm0, %v2330_v6  ;;  %2197 = vmatprep.mubr.msk.f32.mxu1 %vm2329_vm0, %v2330_v6 }
  0xa7   : > { %2103 = vmatmul.mubr.msk.f32.gmra.mrb[70].mxu0 %vm213_vm4, %v858_v25  ;;  %2198 = vmatmul.mubr.msk.f32.gmra.mrb[70].mxu1 %vm213_vm4, %v1198_v26 }
  0xa8   : > { %2105 = vmatprep.mubr.msk.f32.mxu0 %vm2329_vm0, %v2330_v6  ;;  %2200 = vmatprep.mubr.msk.f32.mxu1 %vm2329_vm0, %v2330_v6 }
  0xab   : > { %2106 = vmatmul.mubr.msk.f32.gmra.mrb[72].mxu0 %vm213_vm4, %v859_v27  ;;  %2201 = vmatmul.mubr.msk.f32.gmra.mrb[72].mxu1 %vm213_vm4, %v1199_v28 }
  0xac   : > { %2108 = vmatprep.mubr.msk.f32.mxu0 %vm2329_vm0, %v2330_v6  ;;  %2203 = vmatprep.mubr.msk.f32.mxu1 %vm2329_vm0, %v2330_v6 }
  0xaf   : > { %2109 = vmatmul.mubr.msk.f32.gmra.mrb[74].mxu0 %vm213_vm4, %v860_v29  ;;  %2204 = vmatmul.mubr.msk.f32.gmra.mrb[74].mxu1 %vm213_vm4, %v1200_v30 }
  0xb0   : > { %2111 = vmatprep.mubr.msk.f32.mxu0 %vm2329_vm0, %v2330_v6  ;;  %2206 = vmatprep.mubr.msk.f32.mxu1 %vm2329_vm0, %v2330_v6 }
  0xb3   : > { %2112 = vmatmul.mubr.msk.f32.gmra.mrb[76].mxu0 %vm213_vm4, %v861_v31  ;;  %2207 = vmatmul.mubr.msk.f32.gmra.mrb[76].mxu1 %vm213_vm4, %v1201_v32 }
  0xb4   : > { %2114 = vmatprep.mubr.msk.f32.mxu0 %vm2329_vm0, %v2330_v6  ;;  %2209 = vmatprep.mubr.msk.f32.mxu1 %vm2329_vm0, %v2330_v6 }
  0xb7   : > { %2115 = vmatmul.mubr.msk.f32.gmra.mrb[78].mxu0 %vm213_vm4, %v862_v33  ;;  %2210 = vmatmul.mubr.msk.f32.gmra.mrb[78].mxu1 %vm213_vm4, %v1202_v34 }
  0xb8   : > { %2117 = vmatprep.mubr.msk.f32.mxu0 %vm2329_vm0, %v2330_v6  ;;  %2212 = vmatprep.mubr.msk.f32.mxu1 %vm2329_vm0, %v2330_v6 }
  0xbb   : > { %2118 = vmatmul.mubr.msk.f32.gmra.mrb[80].mxu0 %vm213_vm4, %v863_v35  ;;  %2213 = vmatmul.mubr.msk.f32.gmra.mrb[80].mxu1 %vm213_vm4, %v1203_v36 }
  0xbc   : > { %2120 = vmatprep.mubr.msk.f32.mxu0 %vm2329_vm0, %v2330_v6  ;;  %2215 = vmatprep.mubr.msk.f32.mxu1 %vm2329_vm0, %v2330_v6 }
  0xbf   : > { %2121 = vmatmul.mubr.msk.f32.gmra.mrb[82].mxu0 %vm213_vm4, %v864_v37  ;;  %2216 = vmatmul.mubr.msk.f32.gmra.mrb[82].mxu1 %vm213_vm4, %v1204_v38 }
  0xc0   : > { %2123 = vmatprep.mubr.msk.f32.mxu0 %vm2329_vm0, %v2330_v6  ;;  %2218 = vmatprep.mubr.msk.f32.mxu1 %vm2329_vm0, %v2330_v6 }
  0xc3   : > { %2124 = vmatmul.mubr.msk.f32.gmra.mrb[84].mxu0 %vm213_vm4, %v865_v39  ;;  %2219 = vmatmul.mubr.msk.f32.gmra.mrb[84].mxu1 %vm213_vm4, %v1205_v40 }
  0xc4   : > { %2126 = vmatprep.mubr.msk.f32.mxu0 %vm2329_vm0, %v2330_v6  ;;  %2221 = vmatprep.mubr.msk.f32.mxu1 %vm2329_vm0, %v2330_v6 }
  0xc7   : > { %2127 = vmatmul.mubr.msk.f32.gmra.mrb[86].mxu0 %vm213_vm4, %v866_v41  ;;  %2222 = vmatmul.mubr.msk.f32.gmra.mrb[86].mxu1 %vm213_vm4, %v1206_v42 }
  0xc8   : > { %2129 = vmatprep.mubr.msk.f32.mxu0 %vm2329_vm0, %v2330_v6  ;;  %2224 = vmatprep.mubr.msk.f32.mxu1 %vm2329_vm0, %v2330_v6 }
  0xcb   : > { %2130 = vmatmul.mubr.msk.f32.gmra.mrb[88].mxu0 %vm213_vm4, %v867_v43  ;;  %2225 = vmatmul.mubr.msk.f32.gmra.mrb[88].mxu1 %vm213_vm4, %v1207_v44 }
  0xcc   : > { %2132 = vmatprep.mubr.msk.f32.mxu0 %vm2329_vm0, %v2330_v6  ;;  %2227 = vmatprep.mubr.msk.f32.mxu1 %vm2329_vm0, %v2330_v6 }
  0xcf   : > { %2133 = vmatmul.mubr.msk.f32.gmra.mrb[90].mxu0 %vm213_vm4, %v868_v45  ;;  %2228 = vmatmul.mubr.msk.f32.gmra.mrb[90].mxu1 %vm213_vm4, %v1208_v46 }
  0xd0   : > { %2135 = vmatprep.mubr.msk.f32.mxu0 %vm2329_vm0, %v2330_v6  ;;  %2230 = vmatprep.mubr.msk.f32.mxu1 %vm2329_vm0, %v2330_v6 }
  0xd3   : > { %2136 = vmatmul.mubr.msk.f32.gmra.mrb[92].mxu0 %vm213_vm4, %v869_v47  ;;  %2231 = vmatmul.mubr.msk.f32.gmra.mrb[92].mxu1 %vm213_vm4, %v1209_v48 }
  0xd4   : > { %2138 = vmatprep.mubr.msk.f32.mxu0 %vm2329_vm0, %v2330_v6  ;;  %2233 = vmatprep.mubr.msk.f32.mxu1 %vm2329_vm0, %v2330_v6 }
  0xd7   : > { %2139 = vmatmul.mubr.msk.f32.gmra.mrb[94].mxu0 %vm213_vm4, %v870_v49  ;;  %2234 = vmatmul.mubr.msk.f32.gmra.mrb[94].mxu1 %vm213_vm4, %v1210_v50 }
  0xd8   : > { %2141 = vmatprep.mubr.msk.f32.mxu0 %vm2329_vm0, %v2330_v6  ;;  %2236 = vmatprep.mubr.msk.f32.mxu1 %vm2329_vm0, %v2330_v6 }
  0xdb   : > { %2142 = vmatmul.mubr.msk.f32.gmra.mrb[96].mxu0 %vm213_vm4, %v871_v51  ;;  %2237 = vmatmul.mubr.msk.f32.gmra.mrb[96].mxu1 %vm213_vm4, %v1211_v52 }
  0xdc   : > { %2144 = vmatprep.mubr.msk.f32.mxu0 %vm2329_vm0, %v2330_v6  ;;  %2239 = vmatprep.mubr.msk.f32.mxu1 %vm2329_vm0, %v2330_v6 }
  0xdf   : > { %2145 = vmatmul.mubr.msk.f32.gmra.mrb[98].mxu0 %vm213_vm4, %v872_v53  ;;  %2240 = vmatmul.mubr.msk.f32.gmra.mrb[98].mxu1 %vm213_vm4, %v1212_v54 }
  0xee   : > { %v359_v56 = vpop.f32.mrb[0].mxu0  ;;  %v674_v57 = vpop.f32.mrb[0].mxu1 }
  0xef   : > { %v360_v58 = vadd.f32 %v2837_v55, %v359_v56  ;;  %v1884_v59 = vpop.f32.mrb[1].mxu0  ;;  %v675_v60 = vadd.f32 %v2837_v55, %v674_v57  ;;  %v1979_v61 = vpop.f32.mrb[1].mxu1 }
  0xf1   : > { %v483_v62 = vmax.f32 %v360_v58, 0.0  ;;  %v798_v6 = vmax.f32 %v675_v60, 0.0 }
  0xf2   : > { %v364_v63 = vpop.f32.mrb[2].mxu0  ;;  %v679_v0 = vpop.f32.mrb[2].mxu1 }
  0xf3   : > { %v2841_v1 = vmax.f32 %v483_v62, %v798_v6  ;;  %v365_v2 = vadd.f32 %v2837_v55, %v364_v63  ;;  %v1887_v3 = vpop.f32.mrb[3].mxu0  ;;  %v680_v4 = vadd.f32 %v2837_v55, %v679_v0  ;;  %v1982_v5 = vpop.f32.mrb[3].mxu1 }
  0xf5   : > { %v484_v7 = vmax.f32 %v365_v2, 0.0  ;;  %v799_v8 = vmax.f32 %v680_v4, 0.0 }
  0xf6   : > { %v369_v9 = vpop.f32.mrb[4].mxu0  ;;  %v684_v10 = vpop.f32.mrb[4].mxu1 }
  0xf7   : > { %v2845_v11 = vmax.f32 %v484_v7, %v799_v8  ;;  %v370_v12 = vadd.f32 %v2837_v55, %v369_v9  ;;  %v1890_v13 = vpop.f32.mrb[5].mxu0  ;;  %v685_v14 = vadd.f32 %v2837_v55, %v684_v10  ;;  %v1985_v15 = vpop.f32.mrb[5].mxu1 }
  0xf9   : > { %v485_v16 = vmax.f32 %v370_v12, 0.0  ;;  %v800_v17 = vmax.f32 %v685_v14, 0.0 }
  0xfa   : > { %v374_v18 = vpop.f32.mrb[6].mxu0  ;;  %v689_v19 = vpop.f32.mrb[6].mxu1 }
  0xfb   : > { %v2849_v20 = vmax.f32 %v485_v16, %v800_v17  ;;  %v375_v21 = vadd.f32 %v2837_v55, %v374_v18  ;;  %v1893_v22 = vpop.f32.mrb[7].mxu0  ;;  %v690_v23 = vadd.f32 %v2837_v55, %v689_v19  ;;  %v1988_v24 = vpop.f32.mrb[7].mxu1 }
  0xfd   : > { %v486_v25 = vmax.f32 %v375_v21, 0.0  ;;  %v801_v26 = vmax.f32 %v690_v23, 0.0 }
  0xfe   : > { %v379_v27 = vpop.f32.mrb[8].mxu0  ;;  %v694_v28 = vpop.f32.mrb[8].mxu1 }
  0xff   : > { %v2853_v29 = vmax.f32 %v486_v25, %v801_v26  ;;  %v380_v30 = vadd.f32 %v2837_v55, %v379_v27  ;;  %v1896_v31 = vpop.f32.mrb[9].mxu0  ;;  %v695_v32 = vadd.f32 %v2837_v55, %v694_v28  ;;  %v1991_v33 = vpop.f32.mrb[9].mxu1 }
 0x101   : > { %v487_v34 = vmax.f32 %v380_v30, 0.0  ;;  %v802_v35 = vmax.f32 %v695_v32, 0.0 }
 0x102   : > { %v384_v36 = vpop.f32.mrb[10].mxu0  ;;  %v699_v37 = vpop.f32.mrb[10].mxu1 }
 0x103   : > { %v2857_v38 = vmax.f32 %v487_v34, %v802_v35  ;;  %v385_v39 = vadd.f32 %v2837_v55, %v384_v36  ;;  %v1899_v40 = vpop.f32.mrb[11].mxu0  ;;  %v700_v41 = vadd.f32 %v2837_v55, %v699_v37  ;;  %v1994_v42 = vpop.f32.mrb[11].mxu1 }
 0x105   : > { %v488_v43 = vmax.f32 %v385_v39, 0.0  ;;  %v803_v44 = vmax.f32 %v700_v41, 0.0 }
 0x106   : > { %v389_v45 = vpop.f32.mrb[12].mxu0  ;;  %v704_v46 = vpop.f32.mrb[12].mxu1 }
 0x107   : > { %v2861_v47 = vmax.f32 %v488_v43, %v803_v44  ;;  %v390_v48 = vadd.f32 %v2837_v55, %v389_v45  ;;  %v1902_v49 = vpop.f32.mrb[13].mxu0  ;;  %v705_v50 = vadd.f32 %v2837_v55, %v704_v46  ;;  %v1997_v51 = vpop.f32.mrb[13].mxu1 }
 0x109   : > { %v489_v52 = vmax.f32 %v390_v48, 0.0  ;;  %v804_v53 = vmax.f32 %v705_v50, 0.0 }
 0x10a   : > { %v394_v54 = vpop.f32.mrb[14].mxu0  ;;  %v709_v56 = vpop.f32.mrb[14].mxu1 }
 0x10b   : > { %v2865_v57 = vmax.f32 %v489_v52, %v804_v53  ;;  %v395_v58 = vadd.f32 %v2837_v55, %v394_v54  ;;  %v1905_v59 = vpop.f32.mrb[15].mxu0  ;;  %v710_v60 = vadd.f32 %v2837_v55, %v709_v56  ;;  %v2000_v61 = vpop.f32.mrb[15].mxu1 }
 0x10d   : > { %v490_v62 = vmax.f32 %v395_v58, 0.0  ;;  %v805_v6 = vmax.f32 %v710_v60, 0.0 }
 0x10e   : > { %v399_v63 = vpop.f32.mrb[16].mxu0  ;;  %v714_v0 = vpop.f32.mrb[16].mxu1 }
 0x10f   : > { %v2869_v2 = vmax.f32 %v490_v62, %v805_v6  ;;  %v400_v3 = vadd.f32 %v2837_v55, %v399_v63  ;;  %v1908_v4 = vpop.f32.mrb[17].mxu0  ;;  %v715_v5 = vadd.f32 %v2837_v55, %v714_v0  ;;  %v2003_v7 = vpop.f32.mrb[17].mxu1 }
 0x111   : > { %v491_v8 = vmax.f32 %v400_v3, 0.0  ;;  %v806_v9 = vmax.f32 %v715_v5, 0.0 }
 0x112   : > { %v404_v10 = vpop.f32.mrb[18].mxu0  ;;  %v719_v12 = vpop.f32.mrb[18].mxu1 }
 0x113   : > { %v2873_v13 = vmax.f32 %v491_v8, %v806_v9  ;;  %v405_v14 = vadd.f32 %v2837_v55, %v404_v10  ;;  %v1911_v15 = vpop.f32.mrb[19].mxu0  ;;  %v720_v16 = vadd.f32 %v2837_v55, %v719_v12  ;;  %v2006_v17 = vpop.f32.mrb[19].mxu1 }
 0x115   : > { %v492_v18 = vmax.f32 %v405_v14, 0.0  ;;  %v807_v19 = vmax.f32 %v720_v16, 0.0 }
 0x116   : > { %v409_v21 = vpop.f32.mrb[20].mxu0  ;;  %v724_v22 = vpop.f32.mrb[20].mxu1 }
 0x117   : > { %v2877_v23 = vmax.f32 %v492_v18, %v807_v19  ;;  %v410_v24 = vadd.f32 %v2837_v55, %v409_v21  ;;  %v1914_v25 = vpop.f32.mrb[21].mxu0  ;;  %v725_v26 = vadd.f32 %v2837_v55, %v724_v22  ;;  %v2009_v27 = vpop.f32.mrb[21].mxu1 }
 0x119   : > { %v493_v28 = vmax.f32 %v410_v24, 0.0  ;;  %v808_v30 = vmax.f32 %v725_v26, 0.0 }
 0x11a   : > { %v414_v31 = vpop.f32.mrb[22].mxu0  ;;  %v729_v32 = vpop.f32.mrb[22].mxu1 }
 0x11b   : > { %v2881_v33 = vmax.f32 %v493_v28, %v808_v30  ;;  %v415_v34 = vadd.f32 %v2837_v55, %v414_v31  ;;  %v1917_v35 = vpop.f32.mrb[23].mxu0  ;;  %v730_v36 = vadd.f32 %v2837_v55, %v729_v32  ;;  %v2012_v37 = vpop.f32.mrb[23].mxu1 }
 0x11d   : > { %v494_v39 = vmax.f32 %v415_v34, 0.0  ;;  %v809_v40 = vmax.f32 %v730_v36, 0.0 }
 0x11e   : > { %v419_v41 = vpop.f32.mrb[24].mxu0  ;;  %v734_v42 = vpop.f32.mrb[24].mxu1 }
 0x11f   : > { %v2885_v43 = vmax.f32 %v494_v39, %v809_v40  ;;  %v420_v44 = vadd.f32 %v2837_v55, %v419_v41  ;;  %v1920_v45 = vpop.f32.mrb[25].mxu0  ;;  %v735_v46 = vadd.f32 %v2837_v55, %v734_v42  ;;  %v2015_v48 = vpop.f32.mrb[25].mxu1 }
 0x121   : > { %v495_v49 = vmax.f32 %v420_v44, 0.0  ;;  %v810_v50 = vmax.f32 %v735_v46, 0.0 }
 0x122   : > { %v424_v51 = vpop.f32.mrb[26].mxu0  ;;  %v739_v52 = vpop.f32.mrb[26].mxu1 }
 0x123   : > { %v2889_v53 = vmax.f32 %v495_v49, %v810_v50  ;;  %v425_v54 = vadd.f32 %v2837_v55, %v424_v51  ;;  %v1923_v56 = vpop.f32.mrb[27].mxu0  ;;  %v740_v58 = vadd.f32 %v2837_v55, %v739_v52  ;;  %v2018_v59 = vpop.f32.mrb[27].mxu1 }
 0x125   : > { %v496_v60 = vmax.f32 %v425_v54, 0.0  ;;  %v811_v61 = vmax.f32 %v740_v58, 0.0 }
 0x126   : > { %v429_v62 = vpop.f32.mrb[28].mxu0  ;;  %v744_v6 = vpop.f32.mrb[28].mxu1 }
 0x127   : > { %v2893_v63 = vmax.f32 %v496_v60, %v811_v61  ;;  %v430_v0 = vadd.f32 %v2837_v55, %v429_v62  ;;  %v1926_v3 = vpop.f32.mrb[29].mxu0  ;;  %v745_v4 = vadd.f32 %v2837_v55, %v744_v6  ;;  %v2021_v5 = vpop.f32.mrb[29].mxu1 }
 0x129   : > { %v497_v7 = vmax.f32 %v430_v0, 0.0  ;;  %v812_v8 = vmax.f32 %v745_v4, 0.0 }
 0x12a   : > { %v434_v9 = vpop.f32.mrb[30].mxu0  ;;  %v749_v10 = vpop.f32.mrb[30].mxu1 }
 0x12b   : > { %v2897_v12 = vmax.f32 %v497_v7, %v812_v8  ;;  %v435_v14 = vadd.f32 %v2837_v55, %v434_v9  ;;  %v1929_v15 = vpop.f32.mrb[31].mxu0  ;;  %v750_v16 = vadd.f32 %v2837_v55, %v749_v10  ;;  %v2024_v17 = vpop.f32.mrb[31].mxu1 }
 0x12d   : > { %v498_v18 = vmax.f32 %v435_v14, 0.0  ;;  %v813_v19 = vmax.f32 %v750_v16, 0.0 }
 0x12e   : > { %v439_v21 = vpop.f32.mrb[32].mxu0  ;;  %v754_v22 = vpop.f32.mrb[32].mxu1 }
 0x12f   : > { %v2901_v24 = vmax.f32 %v498_v18, %v813_v19  ;;  %v440_v25 = vadd.f32 %v2837_v55, %v439_v21  ;;  %v1932_v26 = vpop.f32.mrb[33].mxu0  ;;  %v755_v27 = vadd.f32 %v2837_v55, %v754_v22  ;;  %v2027_v28 = vpop.f32.mrb[33].mxu1 }
 0x131   : > { %v499_v30 = vmax.f32 %v440_v25, 0.0  ;;  %v814_v31 = vmax.f32 %v755_v27, 0.0 }
 0x132   : > { %v444_v32 = vpop.f32.mrb[34].mxu0  ;;  %v759_v34 = vpop.f32.mrb[34].mxu1 }
 0x133   : > { %v2905_v35 = vmax.f32 %v499_v30, %v814_v31  ;;  %v445_v36 = vadd.f32 %v2837_v55, %v444_v32  ;;  %v1935_v37 = vpop.f32.mrb[35].mxu0  ;;  %v760_v39 = vadd.f32 %v2837_v55, %v759_v34  ;;  %v2030_v40 = vpop.f32.mrb[35].mxu1 }
 0x135   : > { %v500_v41 = vmax.f32 %v445_v36, 0.0  ;;  %v815_v42 = vmax.f32 %v760_v39, 0.0 }
 0x136   : > { %v449_v44 = vpop.f32.mrb[36].mxu0  ;;  %v764_v45 = vpop.f32.mrb[36].mxu1 }
 0x137   : > { %v2909_v46 = vmax.f32 %v500_v41, %v815_v42  ;;  %v450_v48 = vadd.f32 %v2837_v55, %v449_v44  ;;  %v1938_v49 = vpop.f32.mrb[37].mxu0  ;;  %v765_v50 = vadd.f32 %v2837_v55, %v764_v45  ;;  %v2033_v51 = vpop.f32.mrb[37].mxu1 }
 0x139   : > { %v501_v52 = vmax.f32 %v450_v48, 0.0  ;;  %v816_v54 = vmax.f32 %v765_v50, 0.0 }
 0x13a   : > { %v454_v56 = vpop.f32.mrb[38].mxu0  ;;  %v769_v58 = vpop.f32.mrb[38].mxu1 }
 0x13b   : > { %v2913_v59 = vmax.f32 %v501_v52, %v816_v54  ;;  %v455_v60 = vadd.f32 %v2837_v55, %v454_v56  ;;  %v1941_v61 = vpop.f32.mrb[39].mxu0  ;;  %v770_v62 = vadd.f32 %v2837_v55, %v769_v58  ;;  %v2036_v6 = vpop.f32.mrb[39].mxu1 }
 0x13d   : > { %v502_v0 = vmax.f32 %v455_v60, 0.0  ;;  %v817_v3 = vmax.f32 %v770_v62, 0.0 }
 0x13e   : > { %v459_v4 = vpop.f32.mrb[40].mxu0  ;;  %v774_v5 = vpop.f32.mrb[40].mxu1 }
 0x13f   : > { %v2917_v7 = vmax.f32 %v502_v0, %v817_v3  ;;  %v460_v8 = vadd.f32 %v2837_v55, %v459_v4  ;;  %v1944_v9 = vpop.f32.mrb[41].mxu0  ;;  %v775_v10 = vadd.f32 %v2837_v55, %v774_v5  ;;  %v2039_v14 = vpop.f32.mrb[41].mxu1 }
 0x141   : > { %v503_v15 = vmax.f32 %v460_v8, 0.0  ;;  %v818_v16 = vmax.f32 %v775_v10, 0.0 }
 0x142   : > { %v464_v17 = vpop.f32.mrb[42].mxu0  ;;  %v779_v18 = vpop.f32.mrb[42].mxu1 }
 0x143   : > { %v2921_v19 = vmax.f32 %v503_v15, %v818_v16  ;;  %v465_v21 = vadd.f32 %v2837_v55, %v464_v17  ;;  %v1947_v22 = vpop.f32.mrb[43].mxu0  ;;  %v780_v25 = vadd.f32 %v2837_v55, %v779_v18  ;;  %v2042_v26 = vpop.f32.mrb[43].mxu1 }
 0x145   : > { %v504_v27 = vmax.f32 %v465_v21, 0.0  ;;  %v819_v28 = vmax.f32 %v780_v25, 0.0 }
 0x146   : > { %v469_v30 = vpop.f32.mrb[44].mxu0  ;;  %v784_v31 = vpop.f32.mrb[44].mxu1 }
 0x147   : > { %v2925_v32 = vmax.f32 %v504_v27, %v819_v28  ;;  %v470_v34 = vadd.f32 %v2837_v55, %v469_v30  ;;  %v1950_v36 = vpop.f32.mrb[45].mxu0  ;;  %v785_v37 = vadd.f32 %v2837_v55, %v784_v31  ;;  %v2045_v39 = vpop.f32.mrb[45].mxu1 }
 0x149   : > { %v505_v40 = vmax.f32 %v470_v34, 0.0  ;;  %v820_v41 = vmax.f32 %v785_v37, 0.0 }
 0x14a   : > { %v474_v42 = vpop.f32.mrb[46].mxu0  ;;  %v789_v44 = vpop.f32.mrb[46].mxu1 }
 0x14b   : > { %v2929_v45 = vmax.f32 %v505_v40, %v820_v41  ;;  %v475_v48 = vadd.f32 %v2837_v55, %v474_v42  ;;  %v1953_v49 = vpop.f32.mrb[47].mxu0  ;;  %v790_v50 = vadd.f32 %v2837_v55, %v789_v44  ;;  %v2048_v51 = vpop.f32.mrb[47].mxu1 }
 0x14d   : > { %v506_v52 = vmax.f32 %v475_v48, 0.0  ;;  %v821_v54 = vmax.f32 %v790_v50, 0.0 }
 0x14e   : > { %v479_v56 = vpop.f32.mrb[48].mxu0  ;;  %v794_v58 = vpop.f32.mrb[48].mxu1 }
 0x14f   : > { %v2933_v60 = vmax.f32 %v506_v52, %v821_v54  ;;  %v480_v61 = vadd.f32 %v2837_v55, %v479_v56  ;;  %v1956_v62 = vpop.f32.mrb[49].mxu0  ;;  %v795_v6 = vadd.f32 %v2837_v55, %v794_v58  ;;  %v2051_v0 = vpop.f32.mrb[49].mxu1 }
 0x151   : > { %v507_v3 = vmax.f32 %v480_v61, 0.0  ;;  %v822_v4 = vmax.f32 %v795_v6, 0.0 }
 0x152   : > { %v1014_v5 = vpop.f32.mrb[50].mxu0  ;;  %v1354_v8 = vpop.f32.mrb[50].mxu1 }
 0x153   : > { %v2937_v9 = vmax.f32 %v507_v3, %v822_v4  ;;  %v1015_v10 = vadd.f32 %v2837_v55, %v1014_v5  ;;  %v2074_v14 = vpop.f32.mrb[51].mxu0  ;;  %v1355_v15 = vadd.f32 %v2837_v55, %v1354_v8  ;;  %v2169_v16 = vpop.f32.mrb[51].mxu1 }
 0x155   : > { %v1138_v17 = vmax.f32 %v1015_v10, 0.0  ;;  %v1478_v18 = vmax.f32 %v1355_v15, 0.0 }
 0x156   : > { %v1019_v21 = vpop.f32.mrb[52].mxu0  ;;  %v1359_v22 = vpop.f32.mrb[52].mxu1 }
 0x157   : > { %v1163_v25 = vmax.f32 %v2841_v1, %v1138_v17  ;;  %v1020_v26 = vadd.f32 %v2837_v55, %v1019_v21  ;;  %v2077_v27 = vpop.f32.mrb[53].mxu0  ;;  %v1360_v28 = vadd.f32 %v2837_v55, %v1359_v22  ;;  %v2172_v30 = vpop.f32.mrb[53].mxu1 }
 0x159   : > { %v1503_v31 = vmax.f32 %v1163_v25, %v1478_v18  ;;  %v1139_v34 = vmax.f32 %v1020_v26, 0.0  ;;  %v1479_v36 = vmax.f32 %v1360_v28, 0.0 }
 0x15a   : > { %v1024_v37 = vpop.f32.mrb[54].mxu0  ;;  %v1364_v39 = vpop.f32.mrb[54].mxu1 }
 0x15b   : > { %1528 = vst [vmem:[%s2948_s18] sm:$0xff] %v1503_v31  ;;  %v1164_v1 = vmax.f32 %v2845_v11, %v1139_v34  ;;  %v1025_v40 = vadd.f32 %v2837_v55, %v1024_v37  ;;  %v2080_v41 = vpop.f32.mrb[55].mxu0  ;;  %v1365_v42 = vadd.f32 %v2837_v55, %v1364_v39  ;;  %v2175_v44 = vpop.f32.mrb[55].mxu1 }
 0x15d   : > { %v1504_v48 = vmax.f32 %v1164_v1, %v1479_v36  ;;  %v1140_v49 = vmax.f32 %v1025_v40, 0.0  ;;  %v1480_v50 = vmax.f32 %v1365_v42, 0.0 }
 0x15e   : > { %v1029_v51 = vpop.f32.mrb[56].mxu0  ;;  %v1369_v52 = vpop.f32.mrb[56].mxu1 }
 0x15f   : > { %1529 = vst [vmem:[%s2948_s18 + $0x8] sm:$0xff] %v1504_v48  ;;  %v1165_v54 = vmax.f32 %v2849_v20, %v1140_v49  ;;  %v1030_v56 = vadd.f32 %v2837_v55, %v1029_v51  ;;  %v2083_v58 = vpop.f32.mrb[57].mxu0  ;;  %v1370_v11 = vadd.f32 %v2837_v55, %v1369_v52  ;;  %v2178_v61 = vpop.f32.mrb[57].mxu1 }
 0x161   : > { %v1505_v62 = vmax.f32 %v1165_v54, %v1480_v50  ;;  %v1141_v6 = vmax.f32 %v1030_v56, 0.0  ;;  %v1481_v0 = vmax.f32 %v1370_v11, 0.0 }
 0x162   : > { %v1034_v3 = vpop.f32.mrb[58].mxu0  ;;  %v1374_v4 = vpop.f32.mrb[58].mxu1 }
 0x163   : > { %1530 = vst [vmem:[%s2948_s18 + $0x10] sm:$0xff] %v1505_v62  ;;  %v1166_v5 = vmax.f32 %v2853_v29, %v1141_v6  ;;  %v1035_v8 = vadd.f32 %v2837_v55, %v1034_v3  ;;  %v2086_v10 = vpop.f32.mrb[59].mxu0  ;;  %v1375_v20 = vadd.f32 %v2837_v55, %v1374_v4  ;;  %v2181_v14 = vpop.f32.mrb[59].mxu1 }
 0x165   : > { %v1506_v15 = vmax.f32 %v1166_v5, %v1481_v0  ;;  %v1142_v16 = vmax.f32 %v1035_v8, 0.0  ;;  %v1482_v17 = vmax.f32 %v1375_v20, 0.0 }
 0x166   : > { %v1039_v18 = vpop.f32.mrb[60].mxu0  ;;  %v1379_v21 = vpop.f32.mrb[60].mxu1 }
 0x167   : > { %1531 = vst [vmem:[%s2948_s18 + $0x18] sm:$0xff] %v1506_v15  ;;  %v1167_v22 = vmax.f32 %v2857_v38, %v1142_v16  ;;  %v1040_v25 = vadd.f32 %v2837_v55, %v1039_v18  ;;  %v2089_v26 = vpop.f32.mrb[61].mxu0  ;;  %v1380_v29 = vadd.f32 %v2837_v55, %v1379_v21  ;;  %v2184_v27 = vpop.f32.mrb[61].mxu1 }
 0x169   : > { %v1507_v28 = vmax.f32 %v1167_v22, %v1482_v17  ;;  %v1143_v30 = vmax.f32 %v1040_v25, 0.0  ;;  %v1483_v31 = vmax.f32 %v1380_v29, 0.0 }
 0x16a   : > { %v1044_v34 = vpop.f32.mrb[62].mxu0  ;;  %v1384_v36 = vpop.f32.mrb[62].mxu1 }
 0x16b   : > { %1532 = vst [vmem:[%s2948_s18 + $0x20] sm:$0xff] %v1507_v28  ;;  %v1168_v37 = vmax.f32 %v2861_v47, %v1143_v30  ;;  %v1045_v39 = vadd.f32 %v2837_v55, %v1044_v34  ;;  %v2092_v1 = vpop.f32.mrb[63].mxu0  ;;  %v1385_v38 = vadd.f32 %v2837_v55, %v1384_v36  ;;  %v2187_v40 = vpop.f32.mrb[63].mxu1 }
 0x16d   : > { %v1508_v41 = vmax.f32 %v1168_v37, %v1483_v31  ;;  %v1144_v42 = vmax.f32 %v1045_v39, 0.0  ;;  %v1484_v44 = vmax.f32 %v1385_v38, 0.0 }
 0x16e   : > { %v1049_v48 = vpop.f32.mrb[64].mxu0  ;;  %v1389_v49 = vpop.f32.mrb[64].mxu1 }
 0x16f   : > { %1533 = vst [vmem:[%s2948_s18 + $0x28] sm:$0xff] %v1508_v41  ;;  %v1169_v50 = vmax.f32 %v2865_v57, %v1144_v42  ;;  %v1050_v51 = vadd.f32 %v2837_v55, %v1049_v48  ;;  %v2095_v52 = vpop.f32.mrb[65].mxu0  ;;  %v1390_v47 = vadd.f32 %v2837_v55, %v1389_v49  ;;  %v2190_v54 = vpop.f32.mrb[65].mxu1 }
 0x171   : > { %v1509_v56 = vmax.f32 %v1169_v50, %v1484_v44  ;;  %v1145_v58 = vmax.f32 %v1050_v51, 0.0  ;;  %v1485_v11 = vmax.f32 %v1390_v47, 0.0 }
 0x172   : > { %v1054_v61 = vpop.f32.mrb[66].mxu0  ;;  %v1394_v62 = vpop.f32.mrb[66].mxu1 }
 0x173   : > { %1534 = vst [vmem:[%s2948_s18 + $0x30] sm:$0xff] %v1509_v56  ;;  %v1170_v6 = vmax.f32 %v2869_v2, %v1145_v58  ;;  %v1055_v0 = vadd.f32 %v2837_v55, %v1054_v61  ;;  %v2098_v3 = vpop.f32.mrb[67].mxu0  ;;  %v1395_v57 = vadd.f32 %v2837_v55, %v1394_v62  ;;  %v2193_v4 = vpop.f32.mrb[67].mxu1 }
 0x175   : > { %v1510_v5 = vmax.f32 %v1170_v6, %v1485_v11  ;;  %v1146_v8 = vmax.f32 %v1055_v0, 0.0  ;;  %v1486_v10 = vmax.f32 %v1395_v57, 0.0 }
 0x176   : > { %v1059_v20 = vpop.f32.mrb[68].mxu0  ;;  %v1399_v14 = vpop.f32.mrb[68].mxu1 }
 0x177   : > { %1535 = vst [vmem:[%s2948_s18 + $0x38] sm:$0xff] %v1510_v5  ;;  %v1171_v15 = vmax.f32 %v2873_v13, %v1146_v8  ;;  %v1060_v16 = vadd.f32 %v2837_v55, %v1059_v20  ;;  %v2101_v17 = vpop.f32.mrb[69].mxu0  ;;  %v1400_v2 = vadd.f32 %v2837_v55, %v1399_v14  ;;  %v2196_v18 = vpop.f32.mrb[69].mxu1 }
 0x179   : > { %v1511_v21 = vmax.f32 %v1171_v15, %v1486_v10  ;;  %v1147_v22 = vmax.f32 %v1060_v16, 0.0  ;;  %v1487_v25 = vmax.f32 %v1400_v2, 0.0 }
 0x17a   : > { %v1064_v26 = vpop.f32.mrb[70].mxu0  ;;  %v1404_v29 = vpop.f32.mrb[70].mxu1 }
 0x17b   : > { %1536 = vst [vmem:[%s2948_s18 + $0x40] sm:$0xff] %v1511_v21  ;;  %v1172_v27 = vmax.f32 %v2877_v23, %v1147_v22  ;;  %v1065_v28 = vadd.f32 %v2837_v55, %v1064_v26  ;;  %v2104_v30 = vpop.f32.mrb[71].mxu0  ;;  %v1405_v13 = vadd.f32 %v2837_v55, %v1404_v29  ;;  %v2199_v31 = vpop.f32.mrb[71].mxu1 }
 0x17d   : > { %v1512_v34 = vmax.f32 %v1172_v27, %v1487_v25  ;;  %v1148_v36 = vmax.f32 %v1065_v28, 0.0  ;;  %v1488_v37 = vmax.f32 %v1405_v13, 0.0 }
 0x17e   : > { %v1069_v39 = vpop.f32.mrb[72].mxu0  ;;  %v1409_v1 = vpop.f32.mrb[72].mxu1 }
 0x17f   : > { %1537 = vst [vmem:[%s2948_s18 + $0x48] sm:$0xff] %v1512_v34  ;;  %v1173_v38 = vmax.f32 %v2881_v33, %v1148_v36  ;;  %v1070_v40 = vadd.f32 %v2837_v55, %v1069_v39  ;;  %v2107_v41 = vpop.f32.mrb[73].mxu0  ;;  %v1410_v23 = vadd.f32 %v2837_v55, %v1409_v1  ;;  %v2202_v42 = vpop.f32.mrb[73].mxu1 }
 0x181   : > { %v1513_v44 = vmax.f32 %v1173_v38, %v1488_v37  ;;  %v1149_v48 = vmax.f32 %v1070_v40, 0.0  ;;  %v1489_v49 = vmax.f32 %v1410_v23, 0.0 }
 0x182   : > { %v1074_v50 = vpop.f32.mrb[74].mxu0  ;;  %v1414_v51 = vpop.f32.mrb[74].mxu1 }
 0x183   : > { %1538 = vst [vmem:[%s2948_s18 + $0x50] sm:$0xff] %v1513_v44  ;;  %v1174_v52 = vmax.f32 %v2885_v43, %v1149_v48  ;;  %v1075_v47 = vadd.f32 %v2837_v55, %v1074_v50  ;;  %v2110_v54 = vpop.f32.mrb[75].mxu0  ;;  %v1415_v33 = vadd.f32 %v2837_v55, %v1414_v51  ;;  %v2205_v56 = vpop.f32.mrb[75].mxu1 }
 0x185   : > { %v1514_v58 = vmax.f32 %v1174_v52, %v1489_v49  ;;  %v1150_v11 = vmax.f32 %v1075_v47, 0.0  ;;  %v1490_v61 = vmax.f32 %v1415_v33, 0.0 }
 0x186   : > { %v1079_v62 = vpop.f32.mrb[76].mxu0  ;;  %v1419_v6 = vpop.f32.mrb[76].mxu1 }
 0x187   : > { %1539 = vst [vmem:[%s2948_s18 + $0x58] sm:$0xff] %v1514_v58  ;;  %v1175_v0 = vmax.f32 %v2889_v53, %v1150_v11  ;;  %v1080_v3 = vadd.f32 %v2837_v55, %v1079_v62  ;;  %v2113_v57 = vpop.f32.mrb[77].mxu0  ;;  %v1420_v43 = vadd.f32 %v2837_v55, %v1419_v6  ;;  %v2208_v4 = vpop.f32.mrb[77].mxu1 }
 0x189   : > { %v1515_v5 = vmax.f32 %v1175_v0, %v1490_v61  ;;  %v1151_v8 = vmax.f32 %v1080_v3, 0.0  ;;  %v1491_v10 = vmax.f32 %v1420_v43, 0.0 }
 0x18a   : > { %v1084_v20 = vpop.f32.mrb[78].mxu0  ;;  %v1424_v14 = vpop.f32.mrb[78].mxu1 }
 0x18b   : > { %1540 = vst [vmem:[%s2948_s18 + $0x60] sm:$0xff] %v1515_v5  ;;  %v1176_v15 = vmax.f32 %v2893_v63, %v1151_v8  ;;  %v1085_v16 = vadd.f32 %v2837_v55, %v1084_v20  ;;  %v2116_v17 = vpop.f32.mrb[79].mxu0  ;;  %v1425_v53 = vadd.f32 %v2837_v55, %v1424_v14  ;;  %v2211_v2 = vpop.f32.mrb[79].mxu1 }
 0x18d   : > { %v1516_v18 = vmax.f32 %v1176_v15, %v1491_v10  ;;  %v1152_v21 = vmax.f32 %v1085_v16, 0.0  ;;  %v1492_v22 = vmax.f32 %v1425_v53, 0.0 }
 0x18e   : > { %v1089_v25 = vpop.f32.mrb[80].mxu0  ;;  %v1429_v26 = vpop.f32.mrb[80].mxu1 }
 0x18f   : > { %1541 = vst [vmem:[%s2948_s18 + $0x68] sm:$0xff] %v1516_v18  ;;  %v1177_v29 = vmax.f32 %v2897_v12, %v1152_v21  ;;  %v1090_v27 = vadd.f32 %v2837_v55, %v1089_v25  ;;  %v2119_v28 = vpop.f32.mrb[81].mxu0  ;;  %v1430_v63 = vadd.f32 %v2837_v55, %v1429_v26  ;;  %v2214_v30 = vpop.f32.mrb[81].mxu1 }
 0x191   : > { %v1517_v13 = vmax.f32 %v1177_v29, %v1492_v22  ;;  %v1153_v31 = vmax.f32 %v1090_v27, 0.0  ;;  %v1493_v34 = vmax.f32 %v1430_v63, 0.0 }
 0x192   : > { %v1094_v36 = vpop.f32.mrb[82].mxu0  ;;  %v1434_v37 = vpop.f32.mrb[82].mxu1 }
 0x193   : > { %1542 = vst [vmem:[%s2948_s18 + $0x70] sm:$0xff] %v1517_v13  ;;  %v1178_v39 = vmax.f32 %v2901_v24, %v1153_v31  ;;  %v1095_v1 = vadd.f32 %v2837_v55, %v1094_v36  ;;  %v2122_v38 = vpop.f32.mrb[83].mxu0  ;;  %v1435_v12 = vadd.f32 %v2837_v55, %v1434_v37  ;;  %v2217_v40 = vpop.f32.mrb[83].mxu1 }
 0x195   : > { %v1518_v41 = vmax.f32 %v1178_v39, %v1493_v34  ;;  %v1154_v23 = vmax.f32 %v1095_v1, 0.0  ;;  %v1494_v42 = vmax.f32 %v1435_v12, 0.0 }
 0x196   : > { %v1099_v44 = vpop.f32.mrb[84].mxu0  ;;  %v1439_v48 = vpop.f32.mrb[84].mxu1 }
 0x197   : > { %1543 = vst [vmem:[%s2948_s18 + $0x78] sm:$0xff] %v1518_v41  ;;  %v1179_v49 = vmax.f32 %v2905_v35, %v1154_v23  ;;  %v1100_v50 = vadd.f32 %v2837_v55, %v1099_v44  ;;  %v2125_v51 = vpop.f32.mrb[85].mxu0  ;;  %v1440_v24 = vadd.f32 %v2837_v55, %v1439_v48  ;;  %v2220_v52 = vpop.f32.mrb[85].mxu1 }
 0x199   : > { %v1519_v47 = vmax.f32 %v1179_v49, %v1494_v42  ;;  %v1155_v54 = vmax.f32 %v1100_v50, 0.0  ;;  %v1495_v33 = vmax.f32 %v1440_v24, 0.0 }
 0x19a   : > { %v1104_v56 = vpop.f32.mrb[86].mxu0  ;;  %v1444_v58 = vpop.f32.mrb[86].mxu1 }
 0x19b   : > { %1544 = vst [vmem:[%s2948_s18 + $0x80] sm:$0xff] %v1519_v47  ;;  %v1180_v11 = vmax.f32 %v2909_v46, %v1155_v54  ;;  %v1105_v61 = vadd.f32 %v2837_v55, %v1104_v56  ;;  %v2128_v62 = vpop.f32.mrb[87].mxu0  ;;  %v1445_v35 = vadd.f32 %v2837_v55, %v1444_v58  ;;  %v2223_v6 = vpop.f32.mrb[87].mxu1 }
 0x19d   : > { %v1520_v0 = vmax.f32 %v1180_v11, %v1495_v33  ;;  %v1156_v3 = vmax.f32 %v1105_v61, 0.0  ;;  %v1496_v57 = vmax.f32 %v1445_v35, 0.0 }
 0x19e   : > { %v1109_v43 = vpop.f32.mrb[88].mxu0  ;;  %v1449_v4 = vpop.f32.mrb[88].mxu1 }
 0x19f   : > { %1545 = vst [vmem:[%s2948_s18 + $0x88] sm:$0xff] %v1520_v0  ;;  %v1181_v5 = vmax.f32 %v2913_v59, %v1156_v3  ;;  %v1110_v8 = vadd.f32 %v2837_v55, %v1109_v43  ;;  %v2131_v10 = vpop.f32.mrb[89].mxu0  ;;  %v1450_v46 = vadd.f32 %v2837_v55, %v1449_v4  ;;  %v2226_v20 = vpop.f32.mrb[89].mxu1 }
 0x1a1   : > { %v1521_v14 = vmax.f32 %v1181_v5, %v1496_v57  ;;  %v1157_v15 = vmax.f32 %v1110_v8, 0.0  ;;  %v1497_v16 = vmax.f32 %v1450_v46, 0.0 }
 0x1a2   : > { %v1114_v17 = vpop.f32.mrb[90].mxu0  ;;  %v1454_v53 = vpop.f32.mrb[90].mxu1 }
 0x1a3   : > { %1546 = vst [vmem:[%s2948_s18 + $0x90] sm:$0xff] %v1521_v14  ;;  %v1182_v2 = vmax.f32 %v2917_v7, %v1157_v15  ;;  %v1115_v18 = vadd.f32 %v2837_v55, %v1114_v17  ;;  %v2134_v21 = vpop.f32.mrb[91].mxu0  ;;  %v1455_v59 = vadd.f32 %v2837_v55, %v1454_v53  ;;  %v2229_v22 = vpop.f32.mrb[91].mxu1 }
 0x1a5   : > { %v1522_v25 = vmax.f32 %v1182_v2, %v1497_v16  ;;  %v1158_v26 = vmax.f32 %v1115_v18, 0.0  ;;  %v1498_v29 = vmax.f32 %v1455_v59, 0.0 }
 0x1a6   : > { %v1119_v27 = vpop.f32.mrb[92].mxu0  ;;  %v1459_v28 = vpop.f32.mrb[92].mxu1 }
 0x1a7   : > { %1547 = vst [vmem:[%s2948_s18 + $0x98] sm:$0xff] %v1522_v25  ;;  %v1183_v63 = vmax.f32 %v2921_v19, %v1158_v26  ;;  %v1120_v30 = vadd.f32 %v2837_v55, %v1119_v27  ;;  %v2137_v13 = vpop.f32.mrb[93].mxu0  ;;  %v1460_v7 = vadd.f32 %v2837_v55, %v1459_v28  ;;  %v2232_v31 = vpop.f32.mrb[93].mxu1 }
 0x1a9   : > { %v1523_v34 = vmax.f32 %v1183_v63, %v1498_v29  ;;  %v1159_v36 = vmax.f32 %v1120_v30, 0.0  ;;  %v1499_v37 = vmax.f32 %v1460_v7, 0.0 }
 0x1aa   : > { %v1124_v39 = vpop.f32.mrb[94].mxu0  ;;  %v1464_v1 = vpop.f32.mrb[94].mxu1 }
 0x1ab   : > { %1548 = vst [vmem:[%s2948_s18 + $0xa0] sm:$0xff] %v1523_v34  ;;  %v1184_v38 = vmax.f32 %v2925_v32, %v1159_v36  ;;  %v1125_v12 = vadd.f32 %v2837_v55, %v1124_v39  ;;  %v2140_v40 = vpop.f32.mrb[95].mxu0  ;;  %v1465_v19 = vadd.f32 %v2837_v55, %v1464_v1  ;;  %v2235_v41 = vpop.f32.mrb[95].mxu1 }
 0x1ad   : > { %v1524_v23 = vmax.f32 %v1184_v38, %v1499_v37  ;;  %v1160_v42 = vmax.f32 %v1125_v12, 0.0  ;;  %v1500_v44 = vmax.f32 %v1465_v19, 0.0 }
 0x1ae   : > { %v1129_v48 = vpop.f32.mrb[96].mxu0  ;;  %v1469_v49 = vpop.f32.mrb[96].mxu1 }
 0x1af   : > { %1549 = vst [vmem:[%s2948_s18 + $0xa8] sm:$0xff] %v1524_v23  ;;  %v1185_v50 = vmax.f32 %v2929_v45, %v1160_v42  ;;  %v1130_v51 = vadd.f32 %v2837_v55, %v1129_v48  ;;  %v2143_v24 = vpop.f32.mrb[97].mxu0  ;;  %v1470_v32 = vadd.f32 %v2837_v55, %v1469_v49  ;;  %v2238_v52 = vpop.f32.mrb[97].mxu1 }
 0x1b1   : > { %v1525_v47 = vmax.f32 %v1185_v50, %v1500_v44  ;;  %v1161_v54 = vmax.f32 %v1130_v51, 0.0  ;;  %v1501_v33 = vmax.f32 %v1470_v32, 0.0 }
 0x1b2   : > { %v1134_v56 = vpop.f32.mrb[98].mxu0  ;;  %v1474_v58 = vpop.f32.mrb[98].mxu1 }
 0x1b3   : > { %1550 = vst [vmem:[%s2948_s18 + $0xb0] sm:$0xff] %v1525_v47  ;;  %v1186_v11 = vmax.f32 %v2933_v60, %v1161_v54  ;;  %v1135_v61 = vadd.f32 %v2837_v55, %v1134_v56  ;;  %v2146_v62 = vpop.f32.mrb[99].mxu0  ;;  %v1475_v45 = vadd.f32 %v2837_v55, %v1474_v58  ;;  %v2241_v35 = vpop.f32.mrb[99].mxu1 }
 0x1b5   : > { %v1526_v6 = vmax.f32 %v1186_v11, %v1501_v33  ;;  %v1162_v0 = vmax.f32 %v1135_v61, 0.0  ;;  %v1502_v3 = vmax.f32 %v1475_v45, 0.0 }
 0x1b7   : > { %1551 = vst [vmem:[%s2948_s18 + $0xb8] sm:$0xff] %v1526_v6  ;;  %v1187_v57 = vmax.f32 %v2937_v9, %v1162_v0 }
 0x1b9   : > { %v1527_v43 = vmax.f32 %v1187_v57, %v1502_v3 }
 0x1bb   : > { %1552 = vst [vmem:[%s2948_s18 + $0xc0] sm:$0xff] %v1527_v43 }
 0x1bc PF: > { %s13_s12 = sadd.s32 1, %s2326_s12  }
 0x1bd   : > { %p10_p4 = scmp.ge.s32.totalorder %s13_s12, 4  }
 0x1bf   :  { %12 = sbr.rel (!%p10_p4) target bundleno = 1 (0x1), region = 62 }

// kernel: net_forward.4
= control target key start
LH: loop header
LB: loop body
LE: loop exit
PB: predicated region body
PF: predicated region fallthrough
CT: control target
= control target key end

     0   :  { %s891_s12 = smov 0   ;;  %s1150_s0 = inlined_call_operand.vmem [shape: f32[2,128,150], index: 0, kind: input, shape index: {}]   ;;  %s1151_s1 = inlined_call_operand.vmem [shape: f32[150,128], index: 1, kind: input, shape index: {}]   ;;  %s1152_s2 = inlined_call_operand.vmem [shape: f32[1,128], index: 2, kind: input, shape index: {}]   ;;  %s1153_s3 = inlined_call_operand.vmem [shape: f32[2,32,128], index: 3, kind: output, shape index: {}]  }
   0x1 LB: > { %s709_s13 = sadd.s32 4294967295, %s867_s12   ;;  %p713_p0 = scmp.ge.s32.totalorder %s867_s12, 1  ;;  %s867_s12 = sphi %s891_s12, %s13_s12  }
   0x2   : > { %p137_p1 = scmp.lt.s32.totalorder %s867_s12, 3 }
   0x4   : > { %p138_p2 = pnand %p713_p0, %p137_p1 }
   0x5   : > { %v171_v0 = vld [vmem:[%s1151_s1] sm:$0xff] (!%p138_p2)  ;;  %v172_v1 = vld [vmem:[%s1151_s1 + $0x8] sm:$0xff] (!%p138_p2)  ;;  %v173_v2 = vld [vmem:[%s1151_s1 + $0x10] sm:$0xff] (!%p138_p2)  ;;  %v869_v3 = vmov (!%p138_p2), 0.0|0.0   ;;  %p161_p3 = scmp.lt.s32.totalorder (!%p138_p2), %s709_s13, 1  ;;  %vm205_vm0 = vcmask (!%p138_p2), 179200  }
   0x6   : > { %141 = sbr.rel (%p138_p2) target bundleno = 316 (0x13c), region = 32  ;;  %743 = vmatprep.subr.bf16.mxu0 (!%p138_p2), %v869_v3  ;;  %v909_v4 = vpack.c.bf16 (!%p138_p2), %v172_v1, %v171_v0  ;;  %770 = vmatprep.subr.bf16.mxu1 (!%p138_p2), %v869_v3  ;;  %v174_v5 = vld [vmem:[%s1151_s1 + $0x18] sm:$0xff] (!%p138_p2)  ;;  %v175_v7 = vld [vmem:[%s1151_s1 + $0x20] sm:$0xff] (!%p138_p2)  ;;  %v176_v8 = vld [vmem:[%s1151_s1 + $0x28] sm:$0xff] (!%p138_p2)  ;;  %v870_v30 = vmov (!%p138_p2), 0.0   ;;  %vm218_vm1 = vcmask (!%p138_p2), 1045504  }
   0x7   : > { %v917_v6 = vpack.c.bf16 (!%p138_p2), %v174_v5, %v173_v2  ;;  %v937_v9 = vpack.c.bf16 (!%p138_p2), %v176_v8, %v175_v7  ;;  %v177_v12 = vld [vmem:[%s1151_s1 + $0x30] sm:$0xff] (!%p138_p2)  ;;  %v178_v13 = vld [vmem:[%s1151_s1 + $0x38] sm:$0xff] (!%p138_p2)  ;;  %v179_v15 = vld [vmem:[%s1151_s1 + $0x40] sm:$0xff] (!%p138_p2) }
   0x8   : > { %745 = vmatpush1.bf16.msra.mxu0 (!%p138_p2), %v909_v4  ;;  %772 = vmatpush1.bf16.msra.mxu1 (!%p138_p2), %v909_v4  ;;  %v953_v14 = vpack.c.bf16 (!%p138_p2), %v178_v13, %v177_v12  ;;  %v180_v16 = vld [vmem:[%s1151_s1 + $0x48] sm:$0xff] (!%p138_p2)  ;;  %v181_v18 = vld [vmem:[%s1151_s1 + $0x50] sm:$0xff] (!%p138_p2)  ;;  %v182_v19 = vld [vmem:[%s1151_s1 + $0x58] sm:$0xff] (!%p138_p2) }
   0x9   : > { %746 = vmatprep.subr.bf16.mxu0 (!%p138_p2), %v869_v3  ;;  %773 = vmatprep.subr.bf16.mxu1 (!%p138_p2), %v869_v3  ;;  %v965_v17 = vpack.c.bf16 (!%p138_p2), %v180_v16, %v179_v15  ;;  %v977_v20 = vpack.c.bf16 (!%p138_p2), %v182_v19, %v181_v18  ;;  %v183_v21 = vld [vmem:[%s1151_s1 + $0x60] sm:$0xff] (!%p138_p2)  ;;  %v184_v22 = vld [vmem:[%s1151_s1 + $0x68] sm:$0xff] (!%p138_p2)  ;;  %v185_v24 = vld [vmem:[%s1151_s1 + $0x70] sm:$0xff] (!%p138_p2) }
   0xa   : > { %v989_v23 = vpack.c.bf16 (!%p138_p2), %v184_v22, %v183_v21  ;;  %v186_v25 = vld [vmem:[%s1151_s1 + $0x78] sm:$0xff] (!%p138_p2)  ;;  %v187_v27 = vld [vmem:[%s1151_s1 + $0x80] sm:$0xff] (!%p138_p2)  ;;  %v188_v28 = vld [vmem:[%s1151_s1 + $0x88] sm:$0xff] (!%p138_p2) }
   0xb   : > { %v1001_v26 = vpack.c.bf16 (!%p138_p2), %v186_v25, %v185_v24  ;;  %v1013_v29 = vpack.c.bf16 (!%p138_p2), %v188_v28, %v187_v27  ;;  %v1023_v31 = vld [vmem:[%s1151_s1 + $0x90] sm:$0x3f] (!%p138_p2)  ;;  %v1119_v62 = vld [vmem:[%s1152_s2] ss:$0 sm:$0xff] (!%p138_p2) }
   0xc   : > { %748 = vmatpush1.bf16.msra.mxu0 (!%p138_p2), %v917_v6  ;;  %775 = vmatpush1.bf16.msra.mxu1 (!%p138_p2), %v917_v6 }
   0xd   : > { %s1155_s13 = smov (!%p161_p3, %s709_s13), 1  ;;  %749 = vmatprep.subr.bf16.mxu0 %v869_v3  ;;  %776 = vmatprep.subr.bf16.mxu1 %v869_v3 }
   0xe   : > { %s741_s26 = sshll.u32 %s1155_s13, 8 }
   0xf   : > { %s933_s29 = scalar_lea.vmem %s1150_s0, %s741_s26 }
  0x10   : > { %v192_v10 = vld [vmem:[%s933_s29 + $0x8] sm:$0xff]  ;;  %751 = vmatpush1.bf16.msra.mxu0 %v937_v9  ;;  %778 = vmatpush1.bf16.msra.mxu1 %v937_v9  ;;  %v191_v32 = vld [vmem:[%s933_s29] sm:$0xff]  ;;  %v194_v34 = vld [vmem:[%s933_s29 + $0x18] sm:$0xff] }
  0x11   : > { %v312_v11 = vld [vmem:[%s933_s29 + $0x48] sm:$0xff]  ;;  %720 = vmatprep.mubr.msk.f32.mxu0 %vm205_vm0, %v192_v10  ;;  %752 = vmatprep.subr.bf16.mxu0 %v869_v3  ;;  %v311_v33 = vld [vmem:[%s933_s29 + $0x40] sm:$0xff]  ;;  %v193_v35 = vld [vmem:[%s933_s29 + $0x10] sm:$0xff] }
  0x12   : > { %725 = vmatprep.mubr.msk.f32.mxu1 %vm205_vm0, %v312_v11  ;;  %779 = vmatprep.subr.bf16.mxu1 %v869_v3  ;;  %v314_v36 = vld [vmem:[%s933_s29 + $0x58] sm:$0xff]  ;;  %v313_v37 = vld [vmem:[%s933_s29 + $0x50] sm:$0xff]  ;;  %v196_v38 = vld [vmem:[%s933_s29 + $0x28] sm:$0xff] }
  0x13   : > { %v195_v39 = vld [vmem:[%s933_s29 + $0x20] sm:$0xff]  ;;  %v316_v40 = vld [vmem:[%s933_s29 + $0x68] sm:$0xff]  ;;  %v198_v42 = vld [vmem:[%s933_s29 + $0x38] sm:$0xff] }
  0x14   : > { %754 = vmatpush1.bf16.msra.mxu0 %v953_v14  ;;  %781 = vmatpush1.bf16.msra.mxu1 %v953_v14  ;;  %v315_v41 = vld [vmem:[%s933_s29 + $0x60] sm:$0xff]  ;;  %v197_v43 = vld [vmem:[%s933_s29 + $0x30] sm:$0xff]  ;;  %v318_v44 = vld [vmem:[%s933_s29 + $0x78] sm:$0xff] }
  0x15   : > { %755 = vmatprep.subr.bf16.mxu0 %v869_v3  ;;  %782 = vmatprep.subr.bf16.mxu1 %v869_v3  ;;  %v317_v45 = vld [vmem:[%s933_s29 + $0x70] sm:$0xff]  ;;  %v425_v46 = vld [vmem:[%s933_s29 + $0x88] sm:$0xff]  ;;  %v424_v48 = vld [vmem:[%s933_s29 + $0x80] sm:$0xff] }
  0x16   : > { %v538_v47 = vld [vmem:[%s933_s29 + $0xc8] sm:$0xff]  ;;  %v427_v49 = vld [vmem:[%s933_s29 + $0x98] sm:$0xff]  ;;  %v537_v50 = vld [vmem:[%s933_s29 + $0xc0] sm:$0xff] }
  0x17   : > { %v540_v51 = vld [vmem:[%s933_s29 + $0xd8] sm:$0xff]  ;;  %v426_v52 = vld [vmem:[%s933_s29 + $0x90] sm:$0xff]  ;;  %v429_v53 = vld [vmem:[%s933_s29 + $0xa8] sm:$0xff] }
  0x18   : > { %757 = vmatpush1.bf16.msra.mxu0 %v965_v17  ;;  %784 = vmatpush1.bf16.msra.mxu1 %v965_v17  ;;  %v539_v54 = vld [vmem:[%s933_s29 + $0xd0] sm:$0xff]  ;;  %v542_v55 = vld [vmem:[%s933_s29 + $0xe8] sm:$0xff]  ;;  %v428_v56 = vld [vmem:[%s933_s29 + $0xa0] sm:$0xff] }
  0x19   : > { %758 = vmatprep.subr.bf16.mxu0 %v869_v3  ;;  %785 = vmatprep.subr.bf16.mxu1 %v869_v3  ;;  %v431_v57 = vld [vmem:[%s933_s29 + $0xb8] sm:$0xff]  ;;  %v541_v58 = vld [vmem:[%s933_s29 + $0xe0] sm:$0xff]  ;;  %v430_v60 = vld [vmem:[%s933_s29 + $0xb0] sm:$0xff] }
  0x1a   : > { %v544_v59 = vld [vmem:[%s933_s29 + $0xf8] sm:$0xff]  ;;  %v543_v61 = vld [vmem:[%s933_s29 + $0xf0] sm:$0xff]  ;;  %s742_s29 = sshll.u32 %s1155_s13, 5 }
  0x1b   : > { %s1136_s9 = scalar_lea.vmem %s1153_s3, %s742_s29 }
  0x1c   : > { %760 = vmatpush1.bf16.msra.mxu0 %v977_v20  ;;  %787 = vmatpush1.bf16.msra.mxu1 %v977_v20 }
  0x1d   : > { %761 = vmatprep.subr.bf16.mxu0 %v869_v3  ;;  %788 = vmatprep.subr.bf16.mxu1 %v869_v3 }
  0x20   : > { %763 = vmatpush1.bf16.msra.mxu0 %v989_v23  ;;  %790 = vmatpush1.bf16.msra.mxu1 %v989_v23 }
  0x21   : > { %764 = vmatprep.subr.bf16.mxu0 %v869_v3  ;;  %791 = vmatprep.subr.bf16.mxu1 %v869_v3 }
  0x24   : > { %766 = vmatpush1.bf16.msra.mxu0 %v1001_v26  ;;  %793 = vmatpush1.bf16.msra.mxu1 %v1001_v26 }
  0x25   : > { %767 = vmatprep.subr.bf16.mxu0 %v869_v3  ;;  %794 = vmatprep.subr.bf16.mxu1 %v869_v3 }
  0x28   : > { %769 = vmatpush1.bf16.msra.mxu0 %v1013_v29  ;;  %796 = vmatpush1.bf16.msra.mxu1 %v1013_v29 }
  0x29   : > { %258 = vmatprep.subr.mxu0 %v870_v30  ;;  %367 = vmatprep.subr.mxu1 %v870_v30 }
  0x2c   : > { %719 = vmatpush1.msk.msra.mxu0 %vm218_vm1, %v1023_v31  ;;  %724 = vmatpush1.msk.msra.mxu1 %vm218_vm1, %v1023_v31 }
  0x2d   : > { %287 = vmatmul.mubr.f32.vlgmr.msra.gmra.mrb[0].mxu0 %v191_v32  ;;  %797 = vmatprep.subr.bf16.mxu0 %v869_v3 }
  0x2e   : > { %396 = vmatmul.mubr.f32.vlgmr.msra.gmra.mrb[0].mxu1 %v311_v33  ;;  %799 = vmatpush1.bf16.msra.mxu0 %v909_v4 }
  0x2f   : > { %824 = vmatprep.subr.bf16.mxu1 %v869_v3  ;;  %800 = vmatprep.subr.bf16.mxu0 %v869_v3 }
  0x30   : > { %826 = vmatpush1.bf16.msra.mxu1 %v909_v4  ;;  %721 = vmatprep.mubr.msk.f32.mxu0 %vm205_vm0, %v194_v34 }
  0x31   : > { %827 = vmatprep.subr.bf16.mxu1 %v869_v3  ;;  %292 = vmatmul.mubr.f32.gmra.mrb[2].mxu0 %v193_v35 }
  0x32   : > { %802 = vmatpush1.bf16.msra.mxu0 %v917_v6  ;;  %726 = vmatprep.mubr.msk.f32.mxu1 %vm205_vm0, %v314_v36 }
  0x33   : > { %803 = vmatprep.subr.bf16.mxu0 %v869_v3  ;;  %401 = vmatmul.mubr.f32.gmra.mrb[2].mxu1 %v313_v37 }
  0x34   : > { %829 = vmatpush1.bf16.msra.mxu1 %v917_v6  ;;  %722 = vmatprep.mubr.msk.f32.mxu0 %vm205_vm0, %v196_v38 }
  0x35   : > { %830 = vmatprep.subr.bf16.mxu1 %v869_v3  ;;  %297 = vmatmul.mubr.f32.gmra.mrb[4].mxu0 %v195_v39 }
  0x36   : > { %805 = vmatpush1.bf16.msra.mxu0 %v937_v9  ;;  %727 = vmatprep.mubr.msk.f32.mxu1 %vm205_vm0, %v316_v40 }
  0x37   : > { %806 = vmatprep.subr.bf16.mxu0 %v869_v3  ;;  %406 = vmatmul.mubr.f32.gmra.mrb[4].mxu1 %v315_v41 }
  0x38   : > { %832 = vmatpush1.bf16.msra.mxu1 %v937_v9  ;;  %723 = vmatprep.mubr.msk.f32.mxu0 %vm205_vm0, %v198_v42 }
  0x39   : > { %833 = vmatprep.subr.bf16.mxu1 %v869_v3  ;;  %302 = vmatmul.mubr.f32.gmra.mrb[6].mxu0 %v197_v43 }
  0x3a   : > { %808 = vmatpush1.bf16.msra.mxu0 %v953_v14  ;;  %728 = vmatprep.mubr.msk.f32.mxu1 %vm205_vm0, %v318_v44 }
  0x3b   : > { %809 = vmatprep.subr.bf16.mxu0 %v869_v3  ;;  %411 = vmatmul.mubr.f32.gmra.mrb[6].mxu1 %v317_v45 }
  0x3c   : > { %835 = vmatpush1.bf16.msra.mxu1 %v953_v14  ;;  %730 = vmatprep.mubr.msk.f32.mxu0 %vm205_vm0, %v425_v46 }
  0x3d   : > { %836 = vmatprep.subr.bf16.mxu1 %v869_v3  ;;  %735 = vmatprep.mubr.msk.f32.mxu1 %vm205_vm0, %v538_v47 }
  0x3e   : > { %811 = vmatpush1.bf16.msra.mxu0 %v965_v17 }
  0x3f   : > { %812 = vmatprep.subr.bf16.mxu0 %v869_v3 }
  0x40   : > { %838 = vmatpush1.bf16.msra.mxu1 %v965_v17 }
  0x41   : > { %839 = vmatprep.subr.bf16.mxu1 %v869_v3 }
  0x42   : > { %814 = vmatpush1.bf16.msra.mxu0 %v977_v20 }
  0x43   : > { %815 = vmatprep.subr.bf16.mxu0 %v869_v3 }
  0x44   : > { %841 = vmatpush1.bf16.msra.mxu1 %v977_v20 }
  0x45   : > { %842 = vmatprep.subr.bf16.mxu1 %v869_v3 }
  0x46   : > { %817 = vmatpush1.bf16.msra.mxu0 %v989_v23 }
  0x47   : > { %818 = vmatprep.subr.bf16.mxu0 %v869_v3 }
  0x48   : > { %844 = vmatpush1.bf16.msra.mxu1 %v989_v23 }
  0x49   : > { %845 = vmatprep.subr.bf16.mxu1 %v869_v3 }
  0x4a   : > { %820 = vmatpush1.bf16.msra.mxu0 %v1001_v26 }
  0x4b   : > { %821 = vmatprep.subr.bf16.mxu0 %v869_v3 }
  0x4c   : > { %847 = vmatpush1.bf16.msra.mxu1 %v1001_v26 }
  0x4d   : > { %848 = vmatprep.subr.bf16.mxu1 %v869_v3 }
  0x4e   : > { %823 = vmatpush1.bf16.msra.mxu0 %v1013_v29 }
  0x4f   : > { %480 = vmatprep.subr.mxu0 %v870_v30 }
  0x50   : > { %850 = vmatpush1.bf16.msra.mxu1 %v1013_v29 }
  0x51   : > { %593 = vmatprep.subr.mxu1 %v870_v30 }
  0x52   : > { %729 = vmatpush1.msk.msra.mxu0 %vm218_vm1, %v1023_v31 }
  0x53   : > { %509 = vmatmul.mubr.f32.vlgmr.msra.gmra.mrb[8].mxu0 %v424_v48 }
  0x54   : > { %734 = vmatpush1.msk.msra.mxu1 %vm218_vm1, %v1023_v31  ;;  %731 = vmatprep.mubr.msk.f32.mxu0 %vm205_vm0, %v427_v49 }
  0x55   : > { %622 = vmatmul.mubr.f32.vlgmr.msra.gmra.mrb[8].mxu1 %v537_v50 }
  0x56   : > { %736 = vmatprep.mubr.msk.f32.mxu1 %vm205_vm0, %v540_v51 }
  0x57   : > { %514 = vmatmul.mubr.f32.gmra.mrb[10].mxu0 %v426_v52 }
  0x58   : > { %732 = vmatprep.mubr.msk.f32.mxu0 %vm205_vm0, %v429_v53 }
  0x59   : > { %627 = vmatmul.mubr.f32.gmra.mrb[10].mxu1 %v539_v54 }
  0x5a   : > { %737 = vmatprep.mubr.msk.f32.mxu1 %vm205_vm0, %v542_v55 }
  0x5b   : > { %519 = vmatmul.mubr.f32.gmra.mrb[12].mxu0 %v428_v56 }
  0x5c   : > { %733 = vmatprep.mubr.msk.f32.mxu0 %vm205_vm0, %v431_v57 }
  0x5d   : > { %632 = vmatmul.mubr.f32.gmra.mrb[12].mxu1 %v541_v58 }
  0x5e   : > { %738 = vmatprep.mubr.msk.f32.mxu1 %vm205_vm0, %v544_v59 }
  0x5f   : > { %524 = vmatmul.mubr.f32.gmra.mrb[14].mxu0 %v430_v60 }
  0x61   : > { %637 = vmatmul.mubr.f32.gmra.mrb[14].mxu1 %v543_v61 }
 0x100   : > { %v288_v63 = vpop.f32.mrb[0].mxu0 }
 0x101   : > { %v289_v0 = vadd.f32 %v1119_v62, %v288_v63  ;;  %v290_v1 = vpop.f32.mrb[1].mxu0  ;;  %v397_v2 = vpop.f32.mrb[0].mxu1 }
 0x102   : > { %v398_v3 = vadd.f32 %v1119_v62, %v397_v2  ;;  %v399_v4 = vpop.f32.mrb[1].mxu1 }
 0x103   : > { %v307_v5 = vmax.f32 %v289_v0, 0.0 }
 0x104   : > { %v416_v6 = vmax.f32 %v398_v3, 0.0  ;;  %v293_v7 = vpop.f32.mrb[2].mxu0 }
 0x105   : > { %v294_v8 = vadd.f32 %v1119_v62, %v293_v7  ;;  %v295_v9 = vpop.f32.mrb[3].mxu0 }
 0x106   : > { %v420_v10 = vmax.f32 %v307_v5, %v416_v6  ;;  %v402_v11 = vpop.f32.mrb[2].mxu1 }
 0x107   : > { %v308_v12 = vmax.f32 %v294_v8, 0.0  ;;  %v403_v13 = vadd.f32 %v1119_v62, %v402_v11  ;;  %v404_v14 = vpop.f32.mrb[3].mxu1 }
 0x108   : > { %v298_v15 = vpop.f32.mrb[4].mxu0 }
 0x109   : > { %v417_v16 = vmax.f32 %v403_v13, 0.0  ;;  %v299_v17 = vadd.f32 %v1119_v62, %v298_v15  ;;  %v300_v18 = vpop.f32.mrb[5].mxu0 }
 0x10a   : > { %v407_v19 = vpop.f32.mrb[4].mxu1 }
 0x10b   : > { %v421_v20 = vmax.f32 %v308_v12, %v417_v16  ;;  %v309_v21 = vmax.f32 %v299_v17, 0.0  ;;  %v408_v22 = vadd.f32 %v1119_v62, %v407_v19  ;;  %v409_v23 = vpop.f32.mrb[5].mxu1 }
 0x10c   : > { %v303_v24 = vpop.f32.mrb[6].mxu0 }
 0x10d   : > { %v418_v25 = vmax.f32 %v408_v22, 0.0  ;;  %v304_v26 = vadd.f32 %v1119_v62, %v303_v24  ;;  %v305_v27 = vpop.f32.mrb[7].mxu0 }
 0x10e   : > { %v412_v28 = vpop.f32.mrb[6].mxu1 }
 0x10f   : > { %v422_v29 = vmax.f32 %v309_v21, %v418_v25  ;;  %v310_v30 = vmax.f32 %v304_v26, 0.0  ;;  %v413_v31 = vadd.f32 %v1119_v62, %v412_v28  ;;  %v414_v32 = vpop.f32.mrb[7].mxu1 }
 0x111   : > { %v419_v33 = vmax.f32 %v413_v31, 0.0 }
 0x113   : > { %v423_v34 = vmax.f32 %v310_v30, %v419_v33 }
 0x126   : > { %v510_v35 = vpop.f32.mrb[8].mxu0 }
 0x127   : > { %v511_v36 = vadd.f32 %v1119_v62, %v510_v35  ;;  %v512_v37 = vpop.f32.mrb[9].mxu0 }
 0x128   : > { %v623_v38 = vpop.f32.mrb[8].mxu1 }
 0x129   : > { %v529_v39 = vmax.f32 %v511_v36, 0.0  ;;  %v624_v40 = vadd.f32 %v1119_v62, %v623_v38  ;;  %v625_v41 = vpop.f32.mrb[9].mxu1 }
 0x12a   : > { %v515_v42 = vpop.f32.mrb[10].mxu0 }
 0x12b   : > { %v533_v43 = vmax.f32 %v420_v10, %v529_v39  ;;  %v642_v44 = vmax.f32 %v624_v40, 0.0  ;;  %v516_v45 = vadd.f32 %v1119_v62, %v515_v42  ;;  %v517_v46 = vpop.f32.mrb[11].mxu0 }
 0x12c   : > { %v628_v47 = vpop.f32.mrb[10].mxu1 }
 0x12d   : > { %v646_v48 = vmax.f32 %v533_v43, %v642_v44  ;;  %v530_v49 = vmax.f32 %v516_v45, 0.0  ;;  %v629_v50 = vadd.f32 %v1119_v62, %v628_v47  ;;  %v630_v51 = vpop.f32.mrb[11].mxu1 }
 0x12e   : > { %v520_v52 = vpop.f32.mrb[12].mxu0 }
 0x12f   : > { %650 = vst [vmem:[%s1136_s9] sm:$0xff] %v646_v48  ;;  %v534_v53 = vmax.f32 %v421_v20, %v530_v49  ;;  %v643_v54 = vmax.f32 %v629_v50, 0.0  ;;  %v521_v55 = vadd.f32 %v1119_v62, %v520_v52  ;;  %v522_v56 = vpop.f32.mrb[13].mxu0 }
 0x130   : > { %v633_v57 = vpop.f32.mrb[12].mxu1 }
 0x131   : > { %v647_v58 = vmax.f32 %v534_v53, %v643_v54  ;;  %v531_v59 = vmax.f32 %v521_v55, 0.0  ;;  %v634_v60 = vadd.f32 %v1119_v62, %v633_v57  ;;  %v635_v61 = vpop.f32.mrb[13].mxu1 }
 0x132   : > { %v525_v63 = vpop.f32.mrb[14].mxu0 }
 0x133   : > { %651 = vst [vmem:[%s1136_s9 + $0x8] sm:$0xff] %v647_v58  ;;  %v535_v0 = vmax.f32 %v422_v29, %v531_v59  ;;  %v644_v1 = vmax.f32 %v634_v60, 0.0  ;;  %v526_v2 = vadd.f32 %v1119_v62, %v525_v63  ;;  %v527_v3 = vpop.f32.mrb[15].mxu0 }
 0x134   : > { %v638_v4 = vpop.f32.mrb[14].mxu1 }
 0x135   : > { %v648_v5 = vmax.f32 %v535_v0, %v644_v1  ;;  %v532_v6 = vmax.f32 %v526_v2, 0.0  ;;  %v639_v7 = vadd.f32 %v1119_v62, %v638_v4  ;;  %v640_v8 = vpop.f32.mrb[15].mxu1 }
 0x137   : > { %652 = vst [vmem:[%s1136_s9 + $0x10] sm:$0xff] %v648_v5  ;;  %v536_v9 = vmax.f32 %v423_v34, %v532_v6  ;;  %v645_v10 = vmax.f32 %v639_v7, 0.0 }
 0x139   : > { %v649_v11 = vmax.f32 %v536_v9, %v645_v10 }
 0x13b   : > { %653 = vst [vmem:[%s1136_s9 + $0x18] sm:$0xff] %v649_v11 }
 0x13c PF: > { %s13_s12 = sadd.s32 1, %s867_s12  }
 0x13d   : > { %p10_p4 = scmp.ge.s32.totalorder %s13_s12, 4  }
 0x13f   :  { %12 = sbr.rel (!%p10_p4) target bundleno = 1 (0x1), region = 62 }

// kernel: net_forward.5
= control target key start
LH: loop header
LB: loop body
LE: loop exit
PB: predicated region body
PF: predicated region fallthrough
CT: control target
= control target key end

     0   :  { %v732_v4 = vmov 0.0|0.0   ;;  %v733_v26 = vmov 1983009808   ;;  %v90_v28 = vlaneseq  ;;  %vm106_vm0 = vcmask 130048   ;;  %s1072_s0 = inlined_call_operand.vmem [shape: f32[2,400], index: 0, kind: input, shape index: {}]   ;;  %s1073_s1 = inlined_call_operand.vmem [shape: f32[400,128], index: 1, kind: input, shape index: {}]   ;;  %s1074_s2 = inlined_call_operand.vmem [shape: f32[1,128], index: 2, kind: input, shape index: {}]   ;;  %s1075_s3 = inlined_call_operand.vmem [shape: f32[128,128], index: 3, kind: input, shape index: {}]   ;;  %s1076_s4 = inlined_call_operand.vmem [shape: f32[1,128], index: 4, kind: input, shape index: {}]   ;;  %s1077_s5 = inlined_call_operand.vmem [shape: f32[128,128], index: 5, kind: input, shape index: {}]   ;;  %s1078_s6 = inlined_call_operand.vmem [shape: f32[1,128], index: 6, kind: input, shape index: {}]   ;;  %s1079_s7 = inlined_call_operand.hbm [shape: f32[2,128], index: 7, kind: output, shape index: {}]  }
   0x1   :  { %v44_v0 = vld [vmem:[%s1073_s1 + $0x80] sm:$0xff]  ;;  %v45_v1 = vld [vmem:[%s1073_s1 + $0x88] sm:$0xff]  ;;  %627 = vmatprep.subr.bf16.mxu1 %v732_v4  ;;  %v46_v10 = vld [vmem:[%s1073_s1 + $0x90] sm:$0xff]  ;;  %v88_v27 = vunpack.c.l.s4 %v733_v26 }
   0x2   :  { %v28_v2 = vld [vmem:[%s1073_s1] sm:$0xff]  ;;  %v595_v3 = vpack.c.bf16 %v45_v1, %v44_v0  ;;  %v29_v5 = vld [vmem:[%s1073_s1 + $0x8] sm:$0xff]  ;;  %v47_v11 = vld [vmem:[%s1073_s1 + $0x98] sm:$0xff]  ;;  %v91_v39 = vshrl.u32 %v90_v28, 7 }
   0x3   :  { %v60_v6 = vld [vmem:[%s1073_s1 + $0x100] sm:$0xff]  ;;  %v61_v7 = vld [vmem:[%s1073_s1 + $0x108] sm:$0xff]  ;;  %v597_v8 = vpack.c.bf16 %v29_v5, %v28_v2  ;;  %v30_v12 = vld [vmem:[%s1073_s1 + $0x10] sm:$0xff]  ;;  %v599_v13 = vpack.c.bf16 %v47_v11, %v46_v10  ;;  %v89_v38 = vunpack.c.0.s8 %v88_v27 }
   0x4   :  { %v628_v9 = vpack.c.bf16 %v61_v7, %v60_v6  ;;  %596 = vmatprep.subr.bf16.mxu0 %v595_v3  ;;  %v31_v14 = vld [vmem:[%s1073_s1 + $0x18] sm:$0xff]  ;;  %v62_v15 = vld [vmem:[%s1073_s1 + $0x110] sm:$0xff]  ;;  %v48_v19 = vld [vmem:[%s1073_s1 + $0xa0] sm:$0xff] }
   0x5   :  { %v63_v16 = vld [vmem:[%s1073_s1 + $0x118] sm:$0xff]  ;;  %598 = vmatpush3.bf16.msra.mxu0 %v597_v8  ;;  %v601_v17 = vpack.c.bf16 %v31_v14, %v30_v12  ;;  %v49_v20 = vld [vmem:[%s1073_s1 + $0xa8] sm:$0xff]  ;;  %v32_v21 = vld [vmem:[%s1073_s1 + $0x20] sm:$0xff]  ;;  %v92_v49 = vsub.s32 %v89_v38, %v91_v39 }
   0x6   :  { %629 = vmatpush1.bf16.msra.mxu1 %v628_v9  ;;  %v631_v18 = vpack.c.bf16 %v63_v16, %v62_v15  ;;  %600 = vmatprep.subr.bf16.mxu0 %v599_v13  ;;  %v603_v22 = vpack.c.bf16 %v49_v20, %v48_v19  ;;  %v33_v23 = vld [vmem:[%s1073_s1 + $0x28] sm:$0xff]  ;;  %v64_v24 = vld [vmem:[%s1073_s1 + $0x120] sm:$0xff]  ;;  %v50_v29 = vld [vmem:[%s1073_s1 + $0xb0] sm:$0xff] }
   0x7   :  { %630 = vmatprep.subr.bf16.mxu1 %v732_v4  ;;  %v65_v25 = vld [vmem:[%s1073_s1 + $0x128] sm:$0xff]  ;;  %v51_v30 = vld [vmem:[%s1073_s1 + $0xb8] sm:$0xff]  ;;  %v605_v31 = vpack.c.bf16 %v33_v23, %v32_v21  ;;  %v34_v33 = vld [vmem:[%s1073_s1 + $0x30] sm:$0xff] }
   0x8   :  { %v634_v32 = vpack.c.bf16 %v65_v25, %v64_v24  ;;  %v607_v34 = vpack.c.bf16 %v51_v30, %v50_v29  ;;  %v35_v35 = vld [vmem:[%s1073_s1 + $0x38] sm:$0xff]  ;;  %v66_v36 = vld [vmem:[%s1073_s1 + $0x130] sm:$0xff]  ;;  %v52_v40 = vld [vmem:[%s1073_s1 + $0xc0] sm:$0xff] }
   0x9   :  { %602 = vmatpush3.bf16.msra.mxu0 %v601_v17  ;;  %v67_v37 = vld [vmem:[%s1073_s1 + $0x138] sm:$0xff]  ;;  %v53_v41 = vld [vmem:[%s1073_s1 + $0xc8] sm:$0xff]  ;;  %v609_v42 = vpack.c.bf16 %v35_v35, %v34_v33  ;;  %v36_v44 = vld [vmem:[%s1073_s1 + $0x40] sm:$0xff] }
   0xa   :  { %632 = vmatpush1.bf16.msra.mxu1 %v631_v18  ;;  %604 = vmatprep.subr.bf16.mxu0 %v603_v22  ;;  %v637_v43 = vpack.c.bf16 %v67_v37, %v66_v36  ;;  %v611_v45 = vpack.c.bf16 %v53_v41, %v52_v40  ;;  %v37_v46 = vld [vmem:[%s1073_s1 + $0x48] sm:$0xff]  ;;  %v68_v47 = vld [vmem:[%s1073_s1 + $0x140] sm:$0xff]  ;;  %v54_v50 = vld [vmem:[%s1073_s1 + $0xd0] sm:$0xff] }
   0xb   :  { %633 = vmatprep.subr.bf16.mxu1 %v732_v4  ;;  %v69_v48 = vld [vmem:[%s1073_s1 + $0x148] sm:$0xff]  ;;  %v55_v51 = vld [vmem:[%s1073_s1 + $0xd8] sm:$0xff]  ;;  %v613_v52 = vpack.c.bf16 %v37_v46, %v36_v44  ;;  %v38_v54 = vld [vmem:[%s1073_s1 + $0x50] sm:$0xff] }
   0xc   :  { %v640_v53 = vpack.c.bf16 %v69_v48, %v68_v47  ;;  %v27_v55 = vld [vmem:[%s1072_s0] sm:$0xff]  ;;  %v615_v56 = vpack.c.bf16 %v55_v51, %v54_v50  ;;  %v39_v57 = vld [vmem:[%s1073_s1 + $0x58] sm:$0xff]  ;;  %v70_v58 = vld [vmem:[%s1073_s1 + $0x150] sm:$0xff] }
   0xd   :  { %606 = vmatpush3.bf16.msra.mxu0 %v605_v31  ;;  %v71_v59 = vld [vmem:[%s1073_s1 + $0x158] sm:$0xff]  ;;  %v86_v60 = vcombine.high %v27_v55, %v27_v55  ;;  %v93_v61 = vrot.slane %v27_v55, %v92_v49  ;;  %v56_v62 = vld [vmem:[%s1073_s1 + $0xe0] sm:$0xff]  ;;  %v57_v63 = vld [vmem:[%s1073_s1 + $0xe8] sm:$0xff]  ;;  %v617_v2 = vpack.c.bf16 %v39_v57, %v38_v54 }
   0xe   :  { %635 = vmatpush1.bf16.msra.mxu1 %v634_v32  ;;  %608 = vmatprep.subr.bf16.mxu0 %v607_v34  ;;  %v643_v3 = vpack.c.bf16 %v71_v59, %v70_v58  ;;  %v40_v5 = vld [vmem:[%s1073_s1 + $0x60] sm:$0xff]  ;;  %v41_v6 = vld [vmem:[%s1073_s1 + $0x68] sm:$0xff]  ;;  %v619_v7 = vpack.c.bf16 %v57_v63, %v56_v62 }
   0xf   :  { %636 = vmatprep.subr.bf16.mxu1 %v732_v4  ;;  %v101_v0 = vcombine.high %v93_v61, %v93_v61  ;;  %v100_v1 = vrot.slane %v86_v60, %v92_v49  ;;  %v72_v8 = vld [vmem:[%s1073_s1 + $0x160] sm:$0xff]  ;;  %v73_v9 = vld [vmem:[%s1073_s1 + $0x168] sm:$0xff] }
  0x11   :  { %610 = vmatpush3.bf16.msra.mxu0 %v609_v42  ;;  %v102_v10 = vcombine.high %v100_v1, %v100_v1 }
  0x12   :  { %638 = vmatpush1.bf16.msra.mxu1 %v637_v43  ;;  %612 = vmatprep.subr.bf16.mxu0 %v611_v45 }
  0x13   :  { %639 = vmatprep.subr.bf16.mxu1 %v732_v4 }
  0x15   :  { %614 = vmatpush3.bf16.msra.mxu0 %v613_v52 }
  0x16   :  { %641 = vmatpush1.bf16.msra.mxu1 %v640_v53  ;;  %616 = vmatprep.subr.bf16.mxu0 %v615_v56 }
  0x17   :  { %642 = vmatprep.subr.bf16.mxu1 %v732_v4 }
  0x18   :  { %12 = vsyncpa [#allocation3], 0  ;;  %v58_v11 = vld [vmem:[%s1073_s1 + $0xf0] sm:$0xff]  ;;  %v59_v12 = vld [vmem:[%s1073_s1 + $0xf8] sm:$0xff]  ;;  %173 = vmatprep.mubr.f32.mxu0 %v101_v0  ;;  %453 = vmatprep.mubr.msk.f32.mxu1 %vm106_vm0, %v102_v10  ;;  %v621_v13 = vpack.c.bf16 %v41_v6, %v40_v5  ;;  %v646_v14 = vpack.c.bf16 %v73_v9, %v72_v8  ;;  %vm734_vm1 = vmmov 0   ;;  %v735_v49 = vmov 0.0  }
  0x19   :  { %618 = vmatpush3.bf16.msra.mxu0 %v617_v2  ;;  %v42_v15 = vld [vmem:[%s1073_s1 + $0x70] sm:$0xff]  ;;  %v623_v16 = vpack.c.bf16 %v59_v12, %v58_v11  ;;  %v43_v17 = vld [vmem:[%s1073_s1 + $0x78] sm:$0xff]  ;;  %v76_v22 = vld [vmem:[%s1073_s1 + $0x180] sm:$0xff]  ;;  %s736_s25 = smov [#allocation2]  }
  0x1a   :  { %644 = vmatpush1.bf16.msra.mxu1 %v643_v3  ;;  %620 = vmatprep.subr.bf16.mxu0 %v619_v7  ;;  %v74_v18 = vld [vmem:[%s1073_s1 + $0x170] sm:$0xff]  ;;  %v75_v19 = vld [vmem:[%s1073_s1 + $0x178] sm:$0xff]  ;;  %v625_v20 = vpack.c.bf16 %v43_v17, %v42_v15  ;;  %v77_v23 = vld [vmem:[%s1073_s1 + $0x188] sm:$0xff]  ;;  %s444_s26 = sshll.u32 %s736_s25, 4  ;;  %s445_s26 = int_to_ptr.vmem [resolvable:$true] %s444_s26 }
  0x1b   :  { %645 = vmatprep.subr.bf16.mxu1 %v732_v4  ;;  %v649_v21 = vpack.c.bf16 %v75_v19, %v74_v18  ;;  %v250_v24 = vld [vmem:[%s1075_s3] sm:$0xff]  ;;  %v251_v25 = vld [vmem:[%s1075_s3 + $0x8] sm:$0xff]  ;;  %v652_v26 = vpack.c.bf16 %v77_v23, %v76_v22  ;;  %v252_v28 = vld [vmem:[%s1075_s3 + $0x10] sm:$0xff]  ;;  %p713_p1 = scmp.lt.s32.totalorder %s445_s26, %s445_s26 }
  0x1c   :  { %v655_v27 = vpack.c.bf16 %v251_v25, %v250_v24  ;;  %v253_v29 = vld [vmem:[%s1075_s3 + $0x18] sm:$0xff]  ;;  %v254_v31 = vld [vmem:[%s1075_s3 + $0x20] sm:$0xff]  ;;  %v255_v32 = vld [vmem:[%s1075_s3 + $0x28] sm:$0xff] }
  0x1d   :  { %622 = vmatpush3.bf16.msra.mxu0 %v621_v13  ;;  %v658_v30 = vpack.c.bf16 %v253_v29, %v252_v28  ;;  %v661_v33 = vpack.c.bf16 %v255_v32, %v254_v31  ;;  %v256_v34 = vld [vmem:[%s1075_s3 + $0x30] sm:$0xff]  ;;  %v257_v35 = vld [vmem:[%s1075_s3 + $0x38] sm:$0xff]  ;;  %v258_v37 = vld [vmem:[%s1075_s3 + $0x40] sm:$0xff] }
  0x1e   :  { %647 = vmatpush1.bf16.msra.mxu1 %v646_v14  ;;  %624 = vmatprep.subr.bf16.mxu0 %v623_v16  ;;  %v664_v36 = vpack.c.bf16 %v257_v35, %v256_v34  ;;  %v259_v38 = vld [vmem:[%s1075_s3 + $0x48] sm:$0xff]  ;;  %v260_v40 = vld [vmem:[%s1075_s3 + $0x50] sm:$0xff]  ;;  %v261_v41 = vld [vmem:[%s1075_s3 + $0x58] sm:$0xff] }
  0x1f   :  { %648 = vmatprep.subr.bf16.mxu1 %v732_v4  ;;  %v667_v39 = vpack.c.bf16 %v259_v38, %v258_v37  ;;  %v670_v42 = vpack.c.bf16 %v261_v41, %v260_v40  ;;  %v262_v43 = vld [vmem:[%s1075_s3 + $0x60] sm:$0xff]  ;;  %v263_v44 = vld [vmem:[%s1075_s3 + $0x68] sm:$0xff]  ;;  %v264_v46 = vld [vmem:[%s1075_s3 + $0x70] sm:$0xff] }
  0x20   :  { %v673_v45 = vpack.c.bf16 %v263_v44, %v262_v43  ;;  %v265_v47 = vld [vmem:[%s1075_s3 + $0x78] sm:$0xff]  ;;  %v344_v50 = vld [vmem:[%s1077_s5] sm:$0xff]  ;;  %v345_v51 = vld [vmem:[%s1077_s5 + $0x8] sm:$0xff] }
  0x21   :  { %626 = vmatpush3.bf16.msra.mxu0 %v625_v20  ;;  %v676_v48 = vpack.c.bf16 %v265_v47, %v264_v46  ;;  %v346_v52 = vld [vmem:[%s1077_s5 + $0x10] sm:$0xff]  ;;  %v679_v53 = vpack.c.bf16 %v345_v51, %v344_v50  ;;  %v347_v54 = vld [vmem:[%s1077_s5 + $0x18] sm:$0xff]  ;;  %v348_v56 = vld [vmem:[%s1077_s5 + $0x20] sm:$0xff] }
  0x22   :  { %650 = vmatpush1.bf16.msra.mxu1 %v649_v21  ;;  %654 = vmatprep.subr.bf16.mxu0 %v732_v4  ;;  %v682_v55 = vpack.c.bf16 %v347_v54, %v346_v52  ;;  %v349_v57 = vld [vmem:[%s1077_s5 + $0x28] sm:$0xff]  ;;  %v350_v59 = vld [vmem:[%s1077_s5 + $0x30] sm:$0xff]  ;;  %v351_v60 = vld [vmem:[%s1077_s5 + $0x38] sm:$0xff] }
  0x23   :  { %651 = vmatprep.subr.bf16.mxu1 %v732_v4  ;;  %v685_v58 = vpack.c.bf16 %v349_v57, %v348_v56  ;;  %v352_v62 = vld [vmem:[%s1077_s5 + $0x40] sm:$0xff]  ;;  %v353_v63 = vld [vmem:[%s1077_s5 + $0x48] sm:$0xff]  ;;  %v355_v2 = vld [vmem:[%s1077_s5 + $0x58] sm:$0xff] }
  0x24   :  { %174 = vmatmul.mubr.f32.vlgmr.msra.gmra.mrb[0].mxu0 %v93_v61  ;;  %v688_v61 = vpack.c.bf16 %v351_v60, %v350_v59  ;;  %v691_v0 = vpack.c.bf16 %v353_v63, %v352_v62  ;;  %v356_v5 = vld [vmem:[%s1077_s5 + $0x60] sm:$0xff]  ;;  %v357_v6 = vld [vmem:[%s1077_s5 + $0x68] sm:$0xff]  ;;  %v358_v17 = vld [vmem:[%s1077_s5 + $0x70] sm:$0xff] }
  0x25   :  { %656 = vmatpush3.bf16.msra.mxu0 %v655_v27  ;;  %557 = vmatprep.mubr.msk.f32.mxu0 %vm734_vm1, %v735_v49  ;;  %v697_v7 = vpack.c.bf16 %v357_v6, %v356_v5  ;;  %v452_v10 = vld [vmem:[%s1074_s2] ss:$0 sm:$0xff] }
  0x26   :  { %653 = vmatpush1.bf16.msra.mxu1 %v652_v26  ;;  %657 = vmatprep.subr.bf16.mxu0 %v732_v4  ;;  %v454_v19 = vld [vmem:[%s1076_s4] ss:$0 sm:$0xff] }
  0x27   :  { %678 = vmatprep.subr.bf16.mxu1 %v732_v4  ;;  %v455_v24 = vld [vmem:[%s1078_s6] ss:$0 sm:$0xff] }
  0x29   :  { %244 = vmatmul.mubr.f32.vlgmr.msra.gmra.mrb[0].mxu1 %v100_v1  ;;  %659 = vmatpush3.bf16.msra.mxu0 %v658_v30  ;;  %v354_v1 = vld [vmem:[%s1077_s5 + $0x50] sm:$0xff] }
  0x2a   :  { %660 = vmatprep.subr.bf16.mxu0 %v732_v4  ;;  %592 = vmatprep.mubr.msk.f32.mxu1 %vm734_vm1, %v735_v49  ;;  %v694_v3 = vpack.c.bf16 %v355_v2, %v354_v1 }
  0x2b   :  { %680 = vmatpush3.bf16.msra.mxu1 %v679_v53 }
  0x2c   :  { %681 = vmatprep.subr.bf16.mxu1 %v732_v4 }
  0x2d   :  { %662 = vmatpush3.bf16.msra.mxu0 %v661_v33 }
  0x2e   :  { %663 = vmatprep.subr.bf16.mxu0 %v732_v4 }
  0x2f   :  { %683 = vmatpush3.bf16.msra.mxu1 %v682_v55 }
  0x30   :  { %684 = vmatprep.subr.bf16.mxu1 %v732_v4 }
  0x31   :  { %665 = vmatpush3.bf16.msra.mxu0 %v664_v36 }
  0x32   :  { %666 = vmatprep.subr.bf16.mxu0 %v732_v4 }
  0x33   :  { %686 = vmatpush3.bf16.msra.mxu1 %v685_v58 }
  0x34   :  { %687 = vmatprep.subr.bf16.mxu1 %v732_v4 }
  0x35   :  { %668 = vmatpush3.bf16.msra.mxu0 %v667_v39 }
  0x36   :  { %669 = vmatprep.subr.bf16.mxu0 %v732_v4 }
  0x37   :  { %689 = vmatpush3.bf16.msra.mxu1 %v688_v61 }
  0x38   :  { %690 = vmatprep.subr.bf16.mxu1 %v732_v4 }
  0x39   :  { %671 = vmatpush3.bf16.msra.mxu0 %v670_v42 }
  0x3a   :  { %672 = vmatprep.subr.bf16.mxu0 %v732_v4 }
  0x3b   :  { %692 = vmatpush3.bf16.msra.mxu1 %v691_v0 }
  0x3c   :  { %693 = vmatprep.subr.bf16.mxu1 %v732_v4 }
  0x3d   :  { %674 = vmatpush3.bf16.msra.mxu0 %v673_v45 }
  0x3e   :  { %675 = vmatprep.subr.bf16.mxu0 %v732_v4 }
  0x3f   :  { %695 = vmatpush3.bf16.msra.mxu1 %v694_v3 }
  0x40   :  { %696 = vmatprep.subr.bf16.mxu1 %v732_v4 }
  0x41   :  { %677 = vmatpush3.bf16.msra.mxu0 %v676_v48 }
  0x43   :  { %698 = vmatpush3.bf16.msra.mxu1 %v697_v7 }
  0x44   :  { %699 = vmatprep.subr.bf16.mxu1 %v732_v4  ;;  %v359_v4 = vld [vmem:[%s1077_s5 + $0x78] sm:$0xff]  ;;  %s708_s5 = scalar_lea.vmem %s445_s26, 32 }
  0x45   :  { %v700_v18 = vpack.c.bf16 %v359_v4, %v358_v17  ;;  %p709_p0 = scmp.ne.s32.totalorder %s445_s26, %s708_s5  ;;  %p714_p2 = scmp.lt.s32.totalorder %s708_s5, %s708_s5 }
  0x47   :  { %701 = vmatpush3.bf16.msra.mxu1 %v700_v18  ;;  %p715_p3 = por %p714_p2, %p713_p1 }
  0x49   :  { %p716_p4 = pnand %p715_p3, %p709_p0 }
  0xf7   :  { %v488_v8 = vpop.f32.mrb[0].mxu0 }
  0xf8   :  { %v489_v9 = vpop.f32.mrb[1].mxu0 }
  0xf9   :  { %v490_v11 = vadd.f32 %v489_v9, %v488_v8 }
  0xfb   :  { %v176_v12 = vadd.f32 %v490_v11, %v452_v10 }
  0xfc   :  { %v245_v13 = vpop.f32.mrb[0].mxu1 }
  0xfd   :  { %v247_v14 = vpop.f32.mrb[1].mxu1  ;;  %v246_v15 = vadd.f32 %v245_v13, %v176_v12 }
  0xff   :  { %v249_v16 = vmax.f32 %v246_v15, 0.0 }
 0x101   :  { %558 = vmatmul.mubr.f32.vlgmr.msra.gmra.mrb[2].mxu0 %v249_v16 }
 0x1d4   :  { %v339_v20 = vpop.f32.mrb[2].mxu0 }
 0x1d5   :  { %v340_v21 = vadd.f32 %v454_v19, %v339_v20  ;;  %v559_v22 = vpop.f32.mrb[3].mxu0 }
 0x1d7   :  { %v343_v23 = vmax.f32 %v340_v21, 0.0 }
 0x1d9   :  { %593 = vmatmul.mubr.f32.vlgmr.msra.gmra.mrb[2].mxu1 %v343_v23 }
 0x2ac   :  { %v433_v25 = vpop.f32.mrb[2].mxu1 }
 0x2ad   :  { %v434_v26 = vadd.f32 %v455_v24, %v433_v25  ;;  %v594_v27 = vpop.f32.mrb[3].mxu1 }
 0x2af   :  { %437 = vst [vmem:[#allocation2] sm:$0x3] %v434_v26 }
 0x2b0   :  { %719 = shalt.err (!%p716_p4)
}
 0x2b1   :  { %s720_s28 = scalar_lea.hbm %s1079_s7, 32 }
 0x2b2   :  { %p721_p5 = scmp.ne.s32.totalorder %s1079_s7, %s720_s28  ;;  %p724_p6 = scmp.lt.u32.totalorder %s720_s28, %s1079_s7 }
 0x2b4   :  { %p726_p7 = pnand %p724_p6, %p721_p5 }
 0x2b6   :  { %729 = shalt.err (!%p726_p7)
}
 0x2b7   :  { %447 = dma.vmem_to_hbm [thread:$0]  %s445_s26, 32, %s1079_s7, [#allocation3]  }
 0x2b8   :  { %730 = dma.done.wait [#allocation3], 32  }
 0x2b9   :  { %731 = vsyncadd [#allocation3], 4294967264 }
 0x2ba   :  { %451 = vsyncpa [#allocation3], 1 }

</bundles_post_ra>
